<compile_context>
chip_gen: v7x
topology: tpu7x:2x2x1
jax: 0.10.0
libtpu: 0.0.40
codegen_flags: <defaults>
</compile_context>

<pallas_src>
import functools

import jax
import jax.numpy as jnp
import numpy as np
from jax.experimental import pallas as pl
from jax.experimental.pallas import tpu as pltpu


def _round_up(x, m):
    return ((x + m - 1) // m) * m


def _readout_kernel(nvalid_ref, seg_row_ref, seg_col_ref, h_ref, out_ref,
                    acc_sum_ref, acc_cnt_ref, acc_max_ref,
                    *, tn, d_pad, count_col):
    """One grid step = (layer l, node-chunk k).

    nvalid_ref : (L,) int32 SMEM        valid node count per layer
    seg_row_ref: (1, tn) int32          graph id per node (padding = -1)
    seg_col_ref: (tn, 1) int32          same ids, column layout for the max loop
    h_ref      : (tn, d_pad) f32        node features (padded rows/cols = 0,
                                        optional ones column at `count_col`)
    out_ref    : (b_pad, 3*d_pad) f32   [max | sum | mean] for this layer
    scratch    : sum (b_pad,d_pad), cnt (b_pad,1), running max (b_pad,d_pad)
    """
    l = pl.program_id(0)
    k = pl.program_id(1)
    nk = pl.num_programs(1)
    b_pad = acc_sum_ref.shape[0]

    @pl.when(k == 0)
    def _init():
        acc_sum_ref[...] = jnp.zeros_like(acc_sum_ref)
        acc_cnt_ref[...] = jnp.zeros_like(acc_cnt_ref)
        acc_max_ref[...] = jnp.full(acc_max_ref.shape, -jnp.inf,
                                    acc_max_ref.dtype)

    # Skip node chunks that lie entirely inside this layer's padding.
    @pl.when(k * tn < nvalid_ref[l])
    def _compute():
        seg_row = seg_row_ref[...]                    # (1, tn)
        seg_col = seg_col_ref[...]                    # (tn, 1)
        h = h_ref[...]                                # (tn, d_pad)

        # One-hot membership; padded nodes (id = -1) match no graph.
        onehot_f = (jax.lax.broadcasted_iota(jnp.int32, (b_pad, tn), 0)
                    == seg_row).astype(jnp.float32)   # (b_pad, tn)

        # Segment-sum on the MXU.  If a free padded lane exists, h carries a
        # ones column there, so the per-graph counts fall out of this matmul.
        acc_sum_ref[...] += jnp.dot(onehot_f, h,
                                    preferred_element_type=jnp.float32)
        if count_col is None:
            acc_cnt_ref[...] += jnp.sum(onehot_f, axis=1, keepdims=True)

        # Segment-max: per-graph masked sublane reduce over this chunk only.
        # Working set stays at one (tn, d_pad) tile — no (B, N, D) broadcast.
        def body(b, carry):
            hb = jnp.where(seg_col == b, h, -jnp.inf)        # (tn, d_pad)
            mb = jnp.max(hb, axis=0, keepdims=True)          # (1, d_pad)
            cur = acc_max_ref[pl.ds(b, 1), :]
            acc_max_ref[pl.ds(b, 1), :] = jnp.maximum(cur, mb)
            return carry

        jax.lax.fori_loop(0, b_pad, body, 0, unroll=(b_pad <= 16))

    @pl.when(k == nk - 1)
    def _finalize():
        s = acc_sum_ref[...]
        if count_col is None:
            cnt = acc_cnt_ref[...]
        else:
            cnt = s[:, count_col:count_col + 1]               # (b_pad, 1)
        # torch_scatter semantics: empty groups -> 0 for mean and max.
        mean = s / jnp.maximum(cnt, 1.0)
        mx = jnp.where(cnt > 0.0, acc_max_ref[...], 0.0)
        out_ref[:, 0:d_pad] = mx
        out_ref[:, d_pad:2 * d_pad] = s
        out_ref[:, 2 * d_pad:3 * d_pad] = mean


def graphunet_readout(hs, graph_indicators, batch=None, node_tile=512):
    """Pallas-backed equivalent of GraphUnetReadout.forward.

    Pass `batch=` explicitly to avoid the host-side max (and allow jit).
    """
    layer = len(graph_indicators)
    if batch is None:
        # Matches the module: batch is derived from the data (host sync).
        batch = int(jnp.max(graph_indicators[0])) + 1
    dim = hs[0].shape[1]

    # Hardware-aligned padded sizes.
    b_pad = _round_up(max(batch, 1), 8)
    n_max = max(int(h.shape[0]) for h in hs)
    tn = min(_round_up(node_tile, 128), _round_up(n_max, 128))
    n_pad = _round_up(n_max, tn)
    num_chunks = n_pad // tn
    d_pad = _round_up(dim, 128)
    # If D padding leaves free lanes, use the first one as a ones column so the
    # MXU matmul also produces the per-graph counts.
    count_col = dim if d_pad > dim else None

    h_list, segr_list, segc_list, nvalid = [], [], [], []
    for i in range(layer):
        h = hs[i].astype(jnp.float32)
        n = h.shape[0]
        seg = graph_indicators[layer - 1 - i].astype(jnp.int32)
        if count_col is not None:
            h = jnp.concatenate([h, jnp.ones((n, 1), jnp.float32)], axis=1)
        h = jnp.pad(h, ((0, n_pad - n), (0, d_pad - h.shape[1])))
        seg_p = jnp.pad(seg, (0, n_pad - n), constant_values=-1)
        h_list.append(h)
        segr_list.append(seg_p[None, :])
        segc_list.append(seg_p[:, None])
        nvalid.append(n)

    h_all = jnp.stack(h_list)               # (L, n_pad, d_pad)
    seg_row = jnp.stack(segr_list)          # (L, 1, n_pad)
    seg_col = jnp.stack(segc_list)          # (L, n_pad, 1)
    nvalid = jnp.asarray(nvalid, jnp.int32)  # (L,)

    kernel = functools.partial(_readout_kernel, tn=tn, d_pad=d_pad,
                               count_col=count_col)

    out = pl.pallas_call(
        kernel,
        out_shape=jax.ShapeDtypeStruct((b_pad, layer * 3 * d_pad), jnp.float32),
        grid_spec=pltpu.PrefetchScalarGridSpec(
            num_scalar_prefetch=1,
            grid=(layer, num_chunks),        # reduction (node chunks) last
            in_specs=[
                pl.BlockSpec((None, 1, tn), lambda l, k, nv: (l, 0, k)),
                pl.BlockSpec((None, tn, 1), lambda l, k, nv: (l, k, 0)),
                pl.BlockSpec((None, tn, d_pad), lambda l, k, nv: (l, k, 0)),
            ],
            out_specs=pl.BlockSpec((b_pad, 3 * d_pad), lambda l, k, nv: (0, l)),
            scratch_shapes=[
                pltpu.VMEM((b_pad, d_pad), jnp.float32),   # sum accumulator
                pltpu.VMEM((b_pad, 1), jnp.float32),       # count (fallback)
                pltpu.VMEM((b_pad, d_pad), jnp.float32),   # running max
            ],
        ),
        compiler_params=pltpu.CompilerParams(
            dimension_semantics=("parallel", "arbitrary")),
    )(nvalid, seg_row, seg_col, h_all)

    # (b_pad, L*3*d_pad) with per-layer [max|sum|mean] blocks ->
    # module layout (batch, [max_l0..max_lL | sum_l0.. | mean_l0..]).
    out = out[:batch].reshape(batch, layer, 3, d_pad)[..., :dim]
    return out.transpose(0, 2, 1, 3).reshape(batch, 3 * layer * dim)


def _reference_readout(hs, graph_indicators):
    """Pure-JAX reference mirroring torch_scatter semantics."""
    layer = len(graph_indicators)
    batch = int(jnp.max(graph_indicators[0])) + 1
    sums, means, maxs = [], [], []
    for i in range(layer):
        h = hs[i].astype(jnp.float32)
        seg = graph_indicators[layer - i - 1].astype(jnp.int32)
        onehot = (seg[None, :] == jnp.arange(batch, dtype=jnp.int32)[:, None])
        onehot_f = onehot.astype(jnp.float32)
        s = onehot_f @ h
        cnt = onehot_f.sum(axis=1, keepdims=True)
        mean = s / jnp.maximum(cnt, 1.0)
        masked = jnp.where(onehot[:, :, None], h[None, :, :], -jnp.inf)
        mx = jnp.where(cnt > 0.0, jnp.max(masked, axis=1), 0.0)
        sums.append(s); means.append(mean); maxs.append(mx)
    return jnp.concatenate(
        [jnp.concatenate(maxs, axis=1),
         jnp.concatenate(sums, axis=1),
         jnp.concatenate(means, axis=1)],
        axis=1,
    )


if __name__ == "__main__":
    key = jax.random.PRNGKey(0)

    batch = 3                       # number of graphs in the batch
    dim = 32                        # node feature dim
    node_counts = [20, 12, 6]       # nodes per pooling level (finest -> coarsest)
    layer = len(node_counts)

    # graph_indicators[l] assigns each node at pooling level l to a graph id.
    graph_indicators = []
    for l, n in enumerate(node_counts):
        key, k = jax.random.split(key)
        ids = jax.random.randint(k, (n,), 0, batch, dtype=jnp.int32)
        # guarantee every graph id appears at level 0 (batch = max(ids0)+1)
        ids = ids.at[:batch].set(jnp.arange(batch, dtype=jnp.int32))
        graph_indicators.append(ids)

    # hs[i] pairs with graph_indicators[layer - 1 - i] in the module's forward.
    hs = []
    for i in range(layer):
        n = node_counts[layer - 1 - i]
        key, k = jax.random.split(key)
        hs.append(jax.random.normal(k, (n, dim), dtype=jnp.float32))

    readout = graphunet_readout(hs, graph_indicators)
    readout = jax.block_until_ready(readout)

    expected_cols = 3 * layer * dim
    assert readout.shape == (batch, expected_cols), readout.shape

    ref = _reference_readout(hs, graph_indicators)
    np.testing.assert_allclose(np.asarray(readout), np.asarray(ref),
                               rtol=1e-5, atol=1e-5)

    print("KERNEL_OK")
</pallas_src>

<mosaic_0001>
module attributes {stable_mosaic.version = 11 : i64} {
  func.func @_readout_kernel(%arg0: i32, %arg1: i32, %arg2: memref<3xi32, #tpu.memory_space<smem>>, %arg3: memref<1x1x128xi32, #tpu.memory_space<vmem>>, %arg4: memref<1x128x1xi32, #tpu.memory_space<vmem>>, %arg5: memref<1x128x128xf32, #tpu.memory_space<vmem>>, %arg6: memref<8x384xf32, #tpu.memory_space<vmem>>, %arg7: memref<8x128xf32, #tpu.memory_space<vmem>>, %arg8: memref<8x1xf32, #tpu.memory_space<vmem>>, %arg9: memref<8x128xf32, #tpu.memory_space<vmem>>) attributes {dimension_semantics = [#tpu.dimension_semantics<parallel>, #tpu.dimension_semantics<arbitrary>], iteration_bounds = array<i64: 3, 1>, scalar_prefetch = 1 : i64, scratch_operands = 3 : i64, tpu.core_type = #tpu.core_type<tc>, window_params = [{transform_indices = @transform_0, window_bounds = array<i64: 1, 1, 128>}, {transform_indices = @transform_1, window_bounds = array<i64: 1, 128, 1>}, {transform_indices = @transform_2, window_bounds = array<i64: 1, 128, 128>}, {transform_indices = @transform_3, window_bounds = array<i64: 8, 384>}]} {
    %c0_i32 = arith.constant 0 : i32
    %0 = arith.cmpi eq, %arg1, %c0_i32 : i32
    %1 = arith.extui %0 : i1 to i32
    %c0_i32_0 = arith.constant 0 : i32
    %2 = arith.cmpi ne, %1, %c0_i32_0 : i32
    scf.if %2 {
      %cst = arith.constant 0.000000e+00 : f32
      %12 = vector.broadcast %cst : f32 to vector<8x128xf32>
      %c0 = arith.constant 0 : index
      %c0_4 = arith.constant 0 : index
      %13 = vector.load %arg7[%c0, %c0_4] : memref<8x128xf32, #tpu.memory_space<vmem>>, vector<8x128xf32>
      tpu.vector_store %arg7[%c0, %c0_4], %12 {strides = array<i32>} : memref<8x128xf32, #tpu.memory_space<vmem>>, vector<8x128xf32>,
      %cst_5 = arith.constant 0.000000e+00 : f32
      %14 = vector.broadcast %cst_5 : f32 to vector<8x1xf32>
      %c0_6 = arith.constant 0 : index
      %c0_7 = arith.constant 0 : index
      %15 = vector.load %arg8[%c0_6, %c0_7] : memref<8x1xf32, #tpu.memory_space<vmem>>, vector<8x1xf32>
      tpu.vector_store %arg8[%c0_6, %c0_7], %14 {strides = array<i32>} : memref<8x1xf32, #tpu.memory_space<vmem>>, vector<8x1xf32>,
      %cst_8 = arith.constant 0xFF800000 : f32
      %16 = vector.broadcast %cst_8 : f32 to vector<8x128xf32>
      %c0_9 = arith.constant 0 : index
      %c0_10 = arith.constant 0 : index
      %17 = vector.load %arg9[%c0_9, %c0_10] : memref<8x128xf32, #tpu.memory_space<vmem>>, vector<8x128xf32>
      tpu.vector_store %arg9[%c0_9, %c0_10], %16 {strides = array<i32>} : memref<8x128xf32, #tpu.memory_space<vmem>>, vector<8x128xf32>,
    } else {
    }
    %c128_i32 = arith.constant 128 : i32
    %3 = arith.muli %arg1, %c128_i32 : i32
    %4 = arith.index_cast %arg0 : i32 to index
    %5 = memref.load %arg2[%4] : memref<3xi32, #tpu.memory_space<smem>>
    %6 = arith.cmpi slt, %3, %5 : i32
    %7 = arith.extui %6 : i1 to i32
    %c0_i32_1 = arith.constant 0 : i32
    %8 = arith.cmpi ne, %7, %c0_i32_1 : i32
    scf.if %8 {
      %c0 = arith.constant 0 : index
      %c0_4 = arith.constant 0 : index
      %c0_5 = arith.constant 0 : index
      %12 = vector.load %arg3[%c0, %c0_4, %c0_5] : memref<1x1x128xi32, #tpu.memory_space<vmem>>, vector<1x1x128xi32>
      %13 = vector.shape_cast %12 : vector<1x1x128xi32> to vector<1x128xi32>
      %c0_6 = arith.constant 0 : index
      %c0_7 = arith.constant 0 : index
      %c0_8 = arith.constant 0 : index
      %14 = vector.load %arg4[%c0_6, %c0_7, %c0_8] : memref<1x128x1xi32, #tpu.memory_space<vmem>>, vector<1x128x1xi32>
      %15 = vector.shape_cast %14 : vector<1x128x1xi32> to vector<128x1xi32>
      %c0_9 = arith.constant 0 : index
      %c0_10 = arith.constant 0 : index
      %c0_11 = arith.constant 0 : index
      %16 = vector.load %arg5[%c0_9, %c0_10, %c0_11] : memref<1x128x128xf32, #tpu.memory_space<vmem>>, vector<1x128x128xf32>
      %17 = vector.shape_cast %16 : vector<1x128x128xf32> to vector<128x128xf32>
      %18 = tpu.iota {dimensions = array<i32: 0>} : vector<8x128xi32>
      %19 = vector.broadcast %13 : vector<1x128xi32> to vector<8x128xi32>
      %20 = arith.cmpi eq, %18, %19 : vector<8x128xi32>
      %21 = arith.extui %20 : vector<8x128xi1> to vector<8x128xi32>
      %22 = arith.sitofp %21 : vector<8x128xi32> to vector<8x128xf32>
      %c0_12 = arith.constant 0 : index
      %c0_13 = arith.constant 0 : index
      %23 = vector.load %arg7[%c0_12, %c0_13] : memref<8x128xf32, #tpu.memory_space<vmem>>, vector<8x128xf32>
      %cst = arith.constant dense<0.000000e+00> : vector<8x128xf32>
      %24 = tpu.matmul %22, %17, %cst {dimension_numbers = #tpu.dot_dimension_numbers<[1], [0], [0], [1], [0, 0, 1, 1], [], []>} : vector<8x128xf32>, vector<128x128xf32>, vector<8x128xf32> -> vector<8x128xf32>
      %25 = arith.addf %23, %24 : vector<8x128xf32>
      %c0_14 = arith.constant 0 : index
      %c0_15 = arith.constant 0 : index
      %26 = vector.load %arg7[%c0_14, %c0_15] : memref<8x128xf32, #tpu.memory_space<vmem>>, vector<8x128xf32>
      tpu.vector_store %arg7[%c0_14, %c0_15], %25 {strides = array<i32>} : memref<8x128xf32, #tpu.memory_space<vmem>>, vector<8x128xf32>,
      %c0_i32_16 = arith.constant 0 : i32
      %27 = vector.broadcast %c0_i32_16 : i32 to vector<128x1xi32>
      %28 = arith.cmpi eq, %15, %27 : vector<128x1xi32>
      %cst_17 = arith.constant 0xFF800000 : f32
      %29 = vector.shape_cast %28 : vector<128x1xi1> to vector<128x1xi1>
      %30 = vector.broadcast %29 : vector<128x1xi1> to vector<128x128xi1>
      %31 = vector.broadcast %cst_17 : f32 to vector<128x128xf32>
      %32 = arith.select %30, %17, %31 : vector<128x128xi1>, vector<128x128xf32>
      %cst_18 = arith.constant dense<0xFF800000> : vector<128xf32>
      %33 = vector.multi_reduction <maximumf>, %32, %cst_18 [0] : vector<128x128xf32> to vector<128xf32>
      %34 = vector.shape_cast %33 : vector<128xf32> to vector<1x128xf32>
      %35 = arith.index_cast %c0_i32_16 : i32 to index
      %c0_19 = arith.constant 0 : index
      %36 = vector.load %arg9[%35, %c0_19] : memref<8x128xf32, #tpu.memory_space<vmem>>, vector<1x128xf32>
      %37 = arith.maximumf %36, %34 : vector<1x128xf32>
      %38 = arith.index_cast %c0_i32_16 : i32 to index
      %c0_20 = arith.constant 0 : index
      %39 = vector.load %arg9[%38, %c0_20] : memref<8x128xf32, #tpu.memory_space<vmem>>, vector<1x128xf32>
      tpu.vector_store %arg9[%38, %c0_20], %37 {strides = array<i32>} : memref<8x128xf32, #tpu.memory_space<vmem>>, vector<1x128xf32>,
      %c1_i32 = arith.constant 1 : i32
      %40 = vector.broadcast %c1_i32 : i32 to vector<128x1xi32>
      %41 = arith.cmpi eq, %15, %40 : vector<128x1xi32>
      %cst_21 = arith.constant 0xFF800000 : f32
      %42 = vector.shape_cast %41 : vector<128x1xi1> to vector<128x1xi1>
      %43 = vector.broadcast %42 : vector<128x1xi1> to vector<128x128xi1>
      %44 = vector.broadcast %cst_21 : f32 to vector<128x128xf32>
      %45 = arith.select %43, %17, %44 : vector<128x128xi1>, vector<128x128xf32>
      %cst_22 = arith.constant dense<0xFF800000> : vector<128xf32>
      %46 = vector.multi_reduction <maximumf>, %45, %cst_22 [0] : vector<128x128xf32> to vector<128xf32>
      %47 = vector.shape_cast %46 : vector<128xf32> to vector<1x128xf32>
      %48 = arith.index_cast %c1_i32 : i32 to index
      %c0_23 = arith.constant 0 : index
      %49 = vector.load %arg9[%48, %c0_23] : memref<8x128xf32, #tpu.memory_space<vmem>>, vector<1x128xf32>
      %50 = arith.maximumf %49, %47 : vector<1x128xf32>
      %51 = arith.index_cast %c1_i32 : i32 to index
      %c0_24 = arith.constant 0 : index
      %52 = vector.load %arg9[%51, %c0_24] : memref<8x128xf32, #tpu.memory_space<vmem>>, vector<1x128xf32>
      tpu.vector_store %arg9[%51, %c0_24], %50 {strides = array<i32>} : memref<8x128xf32, #tpu.memory_space<vmem>>, vector<1x128xf32>,
      %c2_i32 = arith.constant 2 : i32
      %53 = vector.broadcast %c2_i32 : i32 to vector<128x1xi32>
      %54 = arith.cmpi eq, %15, %53 : vector<128x1xi32>
      %cst_25 = arith.constant 0xFF800000 : f32
      %55 = vector.shape_cast %54 : vector<128x1xi1> to vector<128x1xi1>
      %56 = vector.broadcast %55 : vector<128x1xi1> to vector<128x128xi1>
      %57 = vector.broadcast %cst_25 : f32 to vector<128x128xf32>
      %58 = arith.select %56, %17, %57 : vector<128x128xi1>, vector<128x128xf32>
      %cst_26 = arith.constant dense<0xFF800000> : vector<128xf32>
      %59 = vector.multi_reduction <maximumf>, %58, %cst_26 [0] : vector<128x128xf32> to vector<128xf32>
      %60 = vector.shape_cast %59 : vector<128xf32> to vector<1x128xf32>
      %61 = arith.index_cast %c2_i32 : i32 to index
      %c0_27 = arith.constant 0 : index
      %62 = vector.load %arg9[%61, %c0_27] : memref<8x128xf32, #tpu.memory_space<vmem>>, vector<1x128xf32>
      %63 = arith.maximumf %62, %60 : vector<1x128xf32>
      %64 = arith.index_cast %c2_i32 : i32 to index
      %c0_28 = arith.constant 0 : index
      %65 = vector.load %arg9[%64, %c0_28] : memref<8x128xf32, #tpu.memory_space<vmem>>, vector<1x128xf32>
      tpu.vector_store %arg9[%64, %c0_28], %63 {strides = array<i32>} : memref<8x128xf32, #tpu.memory_space<vmem>>, vector<1x128xf32>,
      %c3_i32 = arith.constant 3 : i32
      %66 = vector.broadcast %c3_i32 : i32 to vector<128x1xi32>
      %67 = arith.cmpi eq, %15, %66 : vector<128x1xi32>
      %cst_29 = arith.constant 0xFF800000 : f32
      %68 = vector.shape_cast %67 : vector<128x1xi1> to vector<128x1xi1>
      %69 = vector.broadcast %68 : vector<128x1xi1> to vector<128x128xi1>
      %70 = vector.broadcast %cst_29 : f32 to vector<128x128xf32>
      %71 = arith.select %69, %17, %70 : vector<128x128xi1>, vector<128x128xf32>
      %cst_30 = arith.constant dense<0xFF800000> : vector<128xf32>
      %72 = vector.multi_reduction <maximumf>, %71, %cst_30 [0] : vector<128x128xf32> to vector<128xf32>
      %73 = vector.shape_cast %72 : vector<128xf32> to vector<1x128xf32>
      %74 = arith.index_cast %c3_i32 : i32 to index
      %c0_31 = arith.constant 0 : index
      %75 = vector.load %arg9[%74, %c0_31] : memref<8x128xf32, #tpu.memory_space<vmem>>, vector<1x128xf32>
      %76 = arith.maximumf %75, %73 : vector<1x128xf32>
      %77 = arith.index_cast %c3_i32 : i32 to index
      %c0_32 = arith.constant 0 : index
      %78 = vector.load %arg9[%77, %c0_32] : memref<8x128xf32, #tpu.memory_space<vmem>>, vector<1x128xf32>
      tpu.vector_store %arg9[%77, %c0_32], %76 {strides = array<i32>} : memref<8x128xf32, #tpu.memory_space<vmem>>, vector<1x128xf32>,
      %c4_i32 = arith.constant 4 : i32
      %79 = vector.broadcast %c4_i32 : i32 to vector<128x1xi32>
      %80 = arith.cmpi eq, %15, %79 : vector<128x1xi32>
      %cst_33 = arith.constant 0xFF800000 : f32
      %81 = vector.shape_cast %80 : vector<128x1xi1> to vector<128x1xi1>
      %82 = vector.broadcast %81 : vector<128x1xi1> to vector<128x128xi1>
      %83 = vector.broadcast %cst_33 : f32 to vector<128x128xf32>
      %84 = arith.select %82, %17, %83 : vector<128x128xi1>, vector<128x128xf32>
      %cst_34 = arith.constant dense<0xFF800000> : vector<128xf32>
      %85 = vector.multi_reduction <maximumf>, %84, %cst_34 [0] : vector<128x128xf32> to vector<128xf32>
      %86 = vector.shape_cast %85 : vector<128xf32> to vector<1x128xf32>
      %87 = arith.index_cast %c4_i32 : i32 to index
      %c0_35 = arith.constant 0 : index
      %88 = vector.load %arg9[%87, %c0_35] : memref<8x128xf32, #tpu.memory_space<vmem>>, vector<1x128xf32>
      %89 = arith.maximumf %88, %86 : vector<1x128xf32>
      %90 = arith.index_cast %c4_i32 : i32 to index
      %c0_36 = arith.constant 0 : index
      %91 = vector.load %arg9[%90, %c0_36] : memref<8x128xf32, #tpu.memory_space<vmem>>, vector<1x128xf32>
      tpu.vector_store %arg9[%90, %c0_36], %89 {strides = array<i32>} : memref<8x128xf32, #tpu.memory_space<vmem>>, vector<1x128xf32>,
      %c5_i32 = arith.constant 5 : i32
      %92 = vector.broadcast %c5_i32 : i32 to vector<128x1xi32>
      %93 = arith.cmpi eq, %15, %92 : vector<128x1xi32>
      %cst_37 = arith.constant 0xFF800000 : f32
      %94 = vector.shape_cast %93 : vector<128x1xi1> to vector<128x1xi1>
      %95 = vector.broadcast %94 : vector<128x1xi1> to vector<128x128xi1>
      %96 = vector.broadcast %cst_37 : f32 to vector<128x128xf32>
      %97 = arith.select %95, %17, %96 : vector<128x128xi1>, vector<128x128xf32>
      %cst_38 = arith.constant dense<0xFF800000> : vector<128xf32>
      %98 = vector.multi_reduction <maximumf>, %97, %cst_38 [0] : vector<128x128xf32> to vector<128xf32>
      %99 = vector.shape_cast %98 : vector<128xf32> to vector<1x128xf32>
      %100 = arith.index_cast %c5_i32 : i32 to index
      %c0_39 = arith.constant 0 : index
      %101 = vector.load %arg9[%100, %c0_39] : memref<8x128xf32, #tpu.memory_space<vmem>>, vector<1x128xf32>
      %102 = arith.maximumf %101, %99 : vector<1x128xf32>
      %103 = arith.index_cast %c5_i32 : i32 to index
      %c0_40 = arith.constant 0 : index
      %104 = vector.load %arg9[%103, %c0_40] : memref<8x128xf32, #tpu.memory_space<vmem>>, vector<1x128xf32>
      tpu.vector_store %arg9[%103, %c0_40], %102 {strides = array<i32>} : memref<8x128xf32, #tpu.memory_space<vmem>>, vector<1x128xf32>,
      %c6_i32 = arith.constant 6 : i32
      %105 = vector.broadcast %c6_i32 : i32 to vector<128x1xi32>
      %106 = arith.cmpi eq, %15, %105 : vector<128x1xi32>
      %cst_41 = arith.constant 0xFF800000 : f32
      %107 = vector.shape_cast %106 : vector<128x1xi1> to vector<128x1xi1>
      %108 = vector.broadcast %107 : vector<128x1xi1> to vector<128x128xi1>
      %109 = vector.broadcast %cst_41 : f32 to vector<128x128xf32>
      %110 = arith.select %108, %17, %109 : vector<128x128xi1>, vector<128x128xf32>
      %cst_42 = arith.constant dense<0xFF800000> : vector<128xf32>
      %111 = vector.multi_reduction <maximumf>, %110, %cst_42 [0] : vector<128x128xf32> to vector<128xf32>
      %112 = vector.shape_cast %111 : vector<128xf32> to vector<1x128xf32>
      %113 = arith.index_cast %c6_i32 : i32 to index
      %c0_43 = arith.constant 0 : index
      %114 = vector.load %arg9[%113, %c0_43] : memref<8x128xf32, #tpu.memory_space<vmem>>, vector<1x128xf32>
      %115 = arith.maximumf %114, %112 : vector<1x128xf32>
      %116 = arith.index_cast %c6_i32 : i32 to index
      %c0_44 = arith.constant 0 : index
      %117 = vector.load %arg9[%116, %c0_44] : memref<8x128xf32, #tpu.memory_space<vmem>>, vector<1x128xf32>
      tpu.vector_store %arg9[%116, %c0_44], %115 {strides = array<i32>} : memref<8x128xf32, #tpu.memory_space<vmem>>, vector<1x128xf32>,
      %c7_i32 = arith.constant 7 : i32
      %118 = vector.broadcast %c7_i32 : i32 to vector<128x1xi32>
      %119 = arith.cmpi eq, %15, %118 : vector<128x1xi32>
      %cst_45 = arith.constant 0xFF800000 : f32
      %120 = vector.shape_cast %119 : vector<128x1xi1> to vector<128x1xi1>
      %121 = vector.broadcast %120 : vector<128x1xi1> to vector<128x128xi1>
      %122 = vector.broadcast %cst_45 : f32 to vector<128x128xf32>
      %123 = arith.select %121, %17, %122 : vector<128x128xi1>, vector<128x128xf32>
      %cst_46 = arith.constant dense<0xFF800000> : vector<128xf32>
      %124 = vector.multi_reduction <maximumf>, %123, %cst_46 [0] : vector<128x128xf32> to vector<128xf32>
      %125 = vector.shape_cast %124 : vector<128xf32> to vector<1x128xf32>
      %126 = arith.index_cast %c7_i32 : i32 to index
      %c0_47 = arith.constant 0 : index
      %127 = vector.load %arg9[%126, %c0_47] : memref<8x128xf32, #tpu.memory_space<vmem>>, vector<1x128xf32>
      %128 = arith.maximumf %127, %125 : vector<1x128xf32>
      %129 = arith.index_cast %c7_i32 : i32 to index
      %c0_48 = arith.constant 0 : index
      %130 = vector.load %arg9[%129, %c0_48] : memref<8x128xf32, #tpu.memory_space<vmem>>, vector<1x128xf32>
      tpu.vector_store %arg9[%129, %c0_48], %128 {strides = array<i32>} : memref<8x128xf32, #tpu.memory_space<vmem>>, vector<1x128xf32>,
      %c8_i32 = arith.constant 8 : i32
    } else {
    }
    %c0_i32_2 = arith.constant 0 : i32
    %9 = arith.cmpi eq, %arg1, %c0_i32_2 : i32
    %10 = arith.extui %9 : i1 to i32
    %c0_i32_3 = arith.constant 0 : i32
    %11 = arith.cmpi ne, %10, %c0_i32_3 : i32
    scf.if %11 {
      %c0 = arith.constant 0 : index
      %c0_4 = arith.constant 0 : index
      %12 = vector.load %arg7[%c0, %c0_4] : memref<8x128xf32, #tpu.memory_space<vmem>>, vector<8x128xf32>
      %13 = vector.extract_strided_slice %12 {offsets = [0, 32], sizes = [8, 1], strides = [1, 1]} : vector<8x128xf32> to vector<8x1xf32>
      %cst = arith.constant 1.000000e+00 : f32
      %14 = vector.broadcast %cst : f32 to vector<8x1xf32>
      %15 = arith.maximumf %13, %14 : vector<8x1xf32>
      %16 = vector.broadcast %15 : vector<8x1xf32> to vector<8x128xf32>
      %17 = arith.divf %12, %16 : vector<8x128xf32>
      %cst_5 = arith.constant 0.000000e+00 : f32
      %18 = vector.broadcast %cst_5 : f32 to vector<8x1xf32>
      %19 = arith.cmpf ogt, %13, %18 : vector<8x1xf32>
      %c0_6 = arith.constant 0 : index
      %c0_7 = arith.constant 0 : index
      %20 = vector.load %arg9[%c0_6, %c0_7] : memref<8x128xf32, #tpu.memory_space<vmem>>, vector<8x128xf32>
      %cst_8 = arith.constant 0.000000e+00 : f32
      %21 = vector.shape_cast %19 : vector<8x1xi1> to vector<8x1xi1>
      %22 = vector.broadcast %21 : vector<8x1xi1> to vector<8x128xi1>
      %23 = vector.broadcast %cst_8 : f32 to vector<8x128xf32>
      %24 = arith.select %22, %20, %23 : vector<8x128xi1>, vector<8x128xf32>
      %c0_9 = arith.constant 0 : index
      %c0_10 = arith.constant 0 : index
      %25 = vector.load %arg6[%c0_9, %c0_10] : memref<8x384xf32, #tpu.memory_space<vmem>>, vector<8x128xf32>
      tpu.vector_store %arg6[%c0_9, %c0_10], %24 {strides = array<i32>} : memref<8x384xf32, #tpu.memory_space<vmem>>, vector<8x128xf32>,
      %c0_11 = arith.constant 0 : index
      %c128 = arith.constant 128 : index
      %26 = vector.load %arg6[%c0_11, %c128] : memref<8x384xf32, #tpu.memory_space<vmem>>, vector<8x128xf32>
      tpu.vector_store %arg6[%c0_11, %c128], %12 {strides = array<i32>} : memref<8x384xf32, #tpu.memory_space<vmem>>, vector<8x128xf32>,
      %c0_12 = arith.constant 0 : index
      %c256 = arith.constant 256 : index
      %27 = vector.load %arg6[%c0_12, %c256] : memref<8x384xf32, #tpu.memory_space<vmem>>, vector<8x128xf32>
      tpu.vector_store %arg6[%c0_12, %c256], %17 {strides = array<i32>} : memref<8x384xf32, #tpu.memory_space<vmem>>, vector<8x128xf32>,
    } else {
    }
    return
  }
  func.func @transform_0(%arg0: i32, %arg1: i32, %arg2: memref<3xi32, #tpu.memory_space<smem>>) -> (i32, i32, i32) {
    %c0_i32 = arith.constant 0 : i32
    %c0_i32_0 = arith.constant 0 : i32
    return %arg0, %c0_i32, %arg1 : i32, i32, i32
  }
  func.func @transform_1(%arg0: i32, %arg1: i32, %arg2: memref<3xi32, #tpu.memory_space<smem>>) -> (i32, i32, i32) {
    %c0_i32 = arith.constant 0 : i32
    %c0_i32_0 = arith.constant 0 : i32
    return %arg0, %arg1, %c0_i32 : i32, i32, i32
  }
  func.func @transform_2(%arg0: i32, %arg1: i32, %arg2: memref<3xi32, #tpu.memory_space<smem>>) -> (i32, i32, i32) {
    %c0_i32 = arith.constant 0 : i32
    %c0_i32_0 = arith.constant 0 : i32
    return %arg0, %arg1, %c0_i32 : i32, i32, i32
  }
  func.func @transform_3(%arg0: i32, %arg1: i32, %arg2: memref<3xi32, #tpu.memory_space<smem>>) -> (i32, i32) {
    %c0_i32 = arith.constant 0 : i32
    %c0_i32_0 = arith.constant 0 : i32
    return %c0_i32, %arg0 : i32, i32
  }
}

</mosaic_0001>

<bundles_post_ra>
// kernel: tpu_custom_call.1
= control target key start
LH: loop header
LB: loop body
LE: loop exit
PB: predicated region body
PF: predicated region fallthrough
CT: control target
= control target key end

     0   :  { %s2750_s0 = inlined_call_operand.vmem [shape: s32[3], index: 0, kind: input, shape index: {}]   ;;  %s2751_s1 = inlined_call_operand.vmem [shape: s32[3,1,128], index: 1, kind: input, shape index: {}]   ;;  %s2752_s2 = inlined_call_operand.vmem [shape: s32[3,128,1], index: 2, kind: input, shape index: {}]   ;;  %s2753_s3 = inlined_call_operand.vmem [shape: f32[3,128,128], index: 3, kind: input, shape index: {}]   ;;  %s2754_s4 = inlined_call_operand.hbm [shape: f32[8,1152], index: 4, kind: output, shape index: {}]  }
   0x1   :  { %s9_s17 = sshll.u32 %s2750_s0, 4  ;;  %s10_s17 = int_to_ptr.vmem [resolvable:$true] %s9_s17 }
   0x2   :  { %s1823_s18 = scalar_lea.vmem %s10_s17, 16  ;;  %p1828_p1 = scmp.lt.s32.totalorder %s10_s17, %s10_s17 }
   0x3   :  { %p1824_p0 = scmp.ne.s32.totalorder %s10_s17, %s1823_s18  ;;  %p1829_p2 = scmp.lt.s32.totalorder %s1823_s18, %s1823_s18 }
   0x5   :  { %p1830_p3 = por %p1829_p2, %p1828_p1 }
   0x7   :  { %p1831_p4 = pnand %p1830_p3, %p1824_p0 }
   0x9   :  { %1834 = shalt.err (!%p1831_p4)  }
   0xa   :  { %s1917_s19 = smov [#allocation6]  }
   0xb   :  { %12 = dma.vmem_to_smem %s10_s17, 16, %s1917_s19, [#allocation5] }
   0xc   :  { %1887 = dma.done.wait [#allocation5], 16 }
   0xd   :  { %1888 = vsyncadd [#allocation5], 4294967280 }
   0xe   :  { %14 = sfence }
   0xf   :  { %15 = vsyncpa [#allocation8], 0 }
  0x10   :  { %17 = vsyncpa [#allocation8 + $0x1], 0  ;;  %s1956_s20 = smov 0   ;;  %s1958_s21 = smov 0  }
  0x11   :  { %s1960_s0 = smov 0   ;;  %s1962_s22 = smov 0  }
  0x12   :  { %s1964_s23 = smov 0   ;;  %s1966_s24 = smov 0  }
  0x13 LB: > { %s1624_s25 = sadd.s32 4294967295, %s1915_s24   ;;  %s1625_s26 = sadd.s32 4294967294, %s1915_s24   ;;  %s1915_s24 = sphi %s1966_s24, %s23_s24   ;;  %s1911_s23 = sphi %s1964_s23, %s2761_s23   ;;  %s1907_s22 = sphi %s1962_s22, %s2760_s22   ;;  %s1903_s0 = sphi %s1960_s0, %s2759_s0   ;;  %s1899_s21 = sphi %s1958_s21, %s2758_s21   ;;  %s1895_s20 = sphi %s1956_s20, %s2757_s20  }
  0x14   : > { %s35_s27 = sadd.s32 1, %s1911_s23  ;;  %s126_s28 = sadd.s32 1, %s1903_s0 }
  0x15   : > { %p37_p5 = scmp.ge.s32.totalorder %s35_s27, 3  ;;  %p136_p6 = scmp.ne.s32.totalorder %s1903_s0, %s1899_s21 }
  0x16   : > { %p137_p7 = scmp.eq.s32.totalorder %s1624_s25, 2  ;;  %p142_p8 = scmp.ne.s32.totalorder %s1899_s21, %s1895_s20 }
  0x17   : > { %s2763_s27 = smov (%p37_p5, %s35_s27), 0  ;;  %p143_p10 = scmp.eq.s32.totalorder %s1625_s26, 2 }
  0x18   : > { %p1996_p9 = por %p137_p7, %p136_p6  ;;  %s123_s30 = ssub.s32 %s1911_s23, %s2763_s27 }
  0x19   : > { %p1628_p11 = scmp.ge.s32.totalorder %s1915_s24, 1  ;;  %p124_p12 = scmp.eq.s32.totalorder %s123_s30, 0 }
  0x1a   : > { %p2003_p13 = por %p143_p10, %p142_p8  ;;  %p196_p0 = scmp.lt.s32.totalorder %s1915_s24, 4 }
  0x1b   : > { %s2009_s6 = scalar_select %p124_p12, %s1903_s0, %s126_s28  }
  0x1c   : > { %p197_p1 = pnand %p1628_p11, %p196_p0 }
  0x1d   : > { %s236_s7 = sand.u32 (!%p197_p1), 1, %s1899_s21   ;;  %p239_p2 = scmp.lt.s32.totalorder (!%p197_p1), %s1907_s22, 2  ;;  %v1918_v0 = vmov (!%p197_p1), 0.0   ;;  %v1919_v1 = vmov (!%p197_p1), -inf  }
  0x1e   : > { %200 = sbr.rel (%p197_p1) target bundleno = 605 (0x25d), region = 32  ;;  %270 = vst [vmem:[#allocation2] sm:$0xff] (!%p197_p1), %v1918_v0  ;;  %273 = vst [vmem:[#allocation4] sm:$0xff] (!%p197_p1), %v1919_v1  ;;  %s275_s9 = sld [smem:[#allocation6 + %s1907_s22]] (!%p197_p1) }
  0x1f   : > { %s1720_s8 = smul.u32 (!%p197_p1), 24, %s236_s7 }
  0x21   : > { %s2034_s26 = scalar_lea.vmem (!%p197_p1), [#allocation7], %s1720_s8 }
  0x24   : > { %p1634_p3 = scmp.le.s32.totalorder (!%p197_p1), %s275_s9, 0 }
  0x25   : > { %s2017_s10 = scalar_select %p239_p2, %s1907_s22, 2 }
  0x26   : > { %279 = sbr.rel (%p1634_p3) target bundleno = 447 (0x1bf), region = 40  ;;  %v1920_v5 = vmov (!%p1634_p3), 0   ;;  %v1921_v43 = vmov (!%p1634_p3), 0.0|0.0  }
  0x27   : > { %s244_s13 = scalar_lea.vmem %s2751_s1, %s2017_s10  ;;  %s1641_s14 = sshll.u32 %s2017_s10, 7  ;;  %1787 = vset.pattern.permute.xlu1 (!%p1634_p3), %v1920_v5  ;;  %1786 = vset.pattern.permute.xlu0 (!%p1634_p3), %v1920_v5 }
  0x28   : > { %s2027_s17 = scalar_lea.vmem %s2752_s2, %s1641_s14  ;;  %s2032_s25 = scalar_lea.vmem %s2753_s3, %s1641_s14  ;;  %1696 = vmatprep.subr.bf16.mxu0 (!%p1634_p3), %v1921_v43 }
  0x29   : > { %v2037_v2 = vld [vmem:[%s2027_s17 + $0x10] sm:$0xff] (!%p1634_p3)  ;;  %v2040_v3 = vld [vmem:[%s2027_s17] sm:$0xff] (!%p1634_p3)  ;;  %v2043_v4 = vld [vmem:[%s2027_s17 + $0x18] sm:$0xff] (!%p1634_p3) }
  0x2a   : > { %vm397_vm0 = vcmp.eq.s32.totalorder (!%p1634_p3), %v2037_v2, 0  ;;  %vm395_vm1 = vcmp.eq.s32.totalorder (!%p1634_p3), %v2040_v3, 0  ;;  %vm398_vm2 = vcmp.eq.s32.totalorder (!%p1634_p3), %v2043_v4, 0  ;;  %v2051_v6 = vld [vmem:[%s2027_s17 + $0x8] sm:$0xff] (!%p1634_p3)  ;;  %v2060_v10 = vld [vmem:[%s2027_s17 + $0x20] sm:$0xff] (!%p1634_p3)  ;;  %v2067_v13 = vld [vmem:[%s2027_s17 + $0x38] sm:$0xff] (!%p1634_p3) }
  0x2b   : > { %v413_v7 = vsel (!%p1634_p3), %vm397_vm0, 1, %v1920_v5  ;;  %v411_v8 = vsel (!%p1634_p3), %vm395_vm1, 1, %v1920_v5  ;;  %vm396_vm3 = vcmp.eq.s32.totalorder (!%p1634_p3), %v2051_v6, 0  ;;  %v2057_v9 = vld [vmem:[%s2027_s17 + $0x28] sm:$0xff] (!%p1634_p3)  ;;  %v414_v11 = vsel (!%p1634_p3), %vm398_vm2, 1, %v1920_v5  ;;  %v2070_v14 = vld [vmem:[%s2027_s17 + $0x30] sm:$0xff] (!%p1634_p3) }
  0x2c   : > { %434 = vperm.xlu1 (!%p1634_p3), %1787, %v413_v7   ;;  %428 = vperm.xlu0 (!%p1634_p3), %1786, %v411_v8   ;;  %v412_v12 = vsel (!%p1634_p3), %vm396_vm3, 1, %v1920_v5  ;;  %vm400_vm4 = vcmp.eq.s32.totalorder (!%p1634_p3), %v2057_v9, 0  ;;  %vm399_vm5 = vcmp.eq.s32.totalorder (!%p1634_p3), %v2060_v10, 0  ;;  %vm402_vm6 = vcmp.eq.s32.totalorder (!%p1634_p3), %v2067_v13, 0  ;;  %v2077_v17 = vld [vmem:[%s2027_s17 + $0x48] sm:$0xff] (!%p1634_p3)  ;;  %v2080_v18 = vld [vmem:[%s2027_s17 + $0x40] sm:$0xff] (!%p1634_p3) }
  0x2d   : > { %v416_v15 = vsel %vm400_vm4, 1, %v1920_v5  ;;  %v415_v16 = vsel %vm399_vm5, 1, %v1920_v5  ;;  %vm401_vm7 = vcmp.eq.s32.totalorder %v2070_v14, 0  ;;  %v418_v19 = vsel %vm402_vm6, 1, %v1920_v5  ;;  %v2087_v21 = vld [vmem:[%s2027_s17 + $0x58] sm:$0xff]  ;;  %v2090_v22 = vld [vmem:[%s2027_s17 + $0x50] sm:$0xff] }
  0x2e   : > { %v417_v20 = vsel %vm401_vm7, 1, %v1920_v5  ;;  %vm404_vm8 = vcmp.eq.s32.totalorder %v2077_v17, 0  ;;  %vm403_vm9 = vcmp.eq.s32.totalorder %v2080_v18, 0  ;;  %vm406_vm10 = vcmp.eq.s32.totalorder %v2087_v21, 0  ;;  %v2097_v25 = vld [vmem:[%s2027_s17 + $0x68] sm:$0xff]  ;;  %v2100_v26 = vld [vmem:[%s2027_s17 + $0x60] sm:$0xff] }
  0x2f   : > { %v420_v23 = vsel %vm404_vm8, 1, %v1920_v5  ;;  %v419_v24 = vsel %vm403_vm9, 1, %v1920_v5  ;;  %vm405_vm11 = vcmp.eq.s32.totalorder %v2090_v22, 0  ;;  %v422_v27 = vsel %vm406_vm10, 1, %v1920_v5  ;;  %v2107_v29 = vld [vmem:[%s2027_s17 + $0x78] sm:$0xff]  ;;  %v2110_v30 = vld [vmem:[%s2027_s17 + $0x70] sm:$0xff] }
  0x30   : > { %437 = vperm.xlu1 %1787, %v414_v11   ;;  %431 = vperm.xlu0 %1786, %v412_v12   ;;  %v421_v28 = vsel %vm405_vm11, 1, %v1920_v5  ;;  %vm408_vm12 = vcmp.eq.s32.totalorder %v2097_v25, 0  ;;  %vm407_vm13 = vcmp.eq.s32.totalorder %v2100_v26, 0  ;;  %vm410_vm14 = vcmp.eq.s32.totalorder %v2107_v29, 0  ;;  %v2129_v39 = vld [vmem:[%s2032_s25] sm:$0xff]  ;;  %v2132_v40 = vld [vmem:[%s2032_s25 + $0x8] sm:$0xff] }
  0x31   : > { %v424_v31 = vsel %vm408_vm12, 1, %v1920_v5  ;;  %v423_v32 = vsel %vm407_vm13, 1, %v1920_v5  ;;  %vm409_vm15 = vcmp.eq.s32.totalorder %v2110_v30, 0  ;;  %v426_v33 = vsel %vm410_vm14, 1, %v1920_v5  ;;  %v2142_v45 = vld [vmem:[%s2032_s25 + $0x10] sm:$0xff]  ;;  %v2145_v46 = vld [vmem:[%s2032_s25 + $0x18] sm:$0xff] }
  0x32   : > { %v425_v34 = vsel %vm409_vm15, 1, %v1920_v5  ;;  %vm532_vm0 = vcmp.eq.s32.totalorder %v2051_v6, 1  ;;  %vm531_vm1 = vcmp.eq.s32.totalorder %v2040_v3, 1  ;;  %vm534_vm2 = vcmp.eq.s32.totalorder %v2043_v4, 1  ;;  %v2155_v50 = vld [vmem:[%s2032_s25 + $0x28] sm:$0xff]  ;;  %v2158_v51 = vld [vmem:[%s2032_s25 + $0x20] sm:$0xff] }
  0x33   : > { %v548_v35 = vsel %vm532_vm0, 1, %v1920_v5  ;;  %v547_v36 = vsel %vm531_vm1, 1, %v1920_v5  ;;  %vm533_vm3 = vcmp.eq.s32.totalorder %v2037_v2, 1  ;;  %v550_v37 = vsel %vm534_vm2, 1, %v1920_v5  ;;  %v2168_v55 = vld [vmem:[%s2032_s25 + $0x38] sm:$0xff]  ;;  %v2171_v56 = vld [vmem:[%s2032_s25 + $0x30] sm:$0xff] }
  0x34   : > { %443 = vperm.xlu1 %1787, %v416_v15   ;;  %440 = vperm.xlu0 %1786, %v415_v16   ;;  %v549_v38 = vsel %vm533_vm3, 1, %v1920_v5  ;;  %vm536_vm4 = vcmp.eq.s32.totalorder %v2057_v9, 1  ;;  %vm535_vm5 = vcmp.eq.s32.totalorder %v2060_v10, 1  ;;  %v1697_v44 = vpack.c.bf16 %v2132_v40, %v2129_v39  ;;  %v2181_v60 = vld [vmem:[%s2032_s25 + $0x48] sm:$0xff]  ;;  %v2184_v61 = vld [vmem:[%s2032_s25 + $0x40] sm:$0xff]  ;;  %v2194_v1 = vld [vmem:[%s2032_s25 + $0x58] sm:$0xff] }
  0x35   : > { %v552_v41 = vsel %vm536_vm4, 1, %v1920_v5  ;;  %v551_v42 = vsel %vm535_vm5, 1, %v1920_v5  ;;  %vm538_vm6 = vcmp.eq.s32.totalorder %v2067_v13, 1  ;;  %vm537_vm7 = vcmp.eq.s32.totalorder %v2070_v14, 1  ;;  %v2197_v7 = vld [vmem:[%s2032_s25 + $0x50] sm:$0xff]  ;;  %v2207_v15 = vld [vmem:[%s2032_s25 + $0x68] sm:$0xff] }
  0x36   : > { %1698 = vmatpush3.bf16.msra.mxu0 %v1697_v44  ;;  %v1700_v47 = vpack.c.bf16 %v2145_v46, %v2142_v45  ;;  %v554_v48 = vsel %vm538_vm6, 1, %v1920_v5  ;;  %v553_v49 = vsel %vm537_vm7, 1, %v1920_v5  ;;  %vm540_vm8 = vcmp.eq.s32.totalorder %v2077_v17, 1  ;;  %v2210_v16 = vld [vmem:[%s2032_s25 + $0x60] sm:$0xff] }
  0x37   : > { %1699 = vmatprep.subr.bf16.mxu0 %v1921_v43  ;;  %vm539_vm9 = vcmp.eq.s32.totalorder %v2080_v18, 1  ;;  %v1703_v52 = vpack.c.bf16 %v2155_v50, %v2158_v51  ;;  %v556_v53 = vsel %vm540_vm8, 1, %v1920_v5  ;;  %vm542_vm10 = vcmp.eq.s32.totalorder %v2087_v21, 1 }
  0x38   : > { %449 = vperm.xlu1 %1787, %v418_v19   ;;  %446 = vperm.xlu0 %1786, %v417_v20   ;;  %v555_v54 = vsel %vm539_vm9, 1, %v1920_v5  ;;  %vm541_vm11 = vcmp.eq.s32.totalorder %v2090_v22, 1  ;;  %v1706_v57 = vpack.c.bf16 %v2168_v55, %v2171_v56  ;;  %v558_v58 = vsel %vm542_vm10, 1, %v1920_v5 }
  0x39   : > { %v557_v59 = vsel %vm541_vm11, 1, %v1920_v5  ;;  %vm544_vm12 = vcmp.eq.s32.totalorder %v2097_v25, 1  ;;  %vm543_vm13 = vcmp.eq.s32.totalorder %v2100_v26, 1  ;;  %v1709_v62 = vpack.c.bf16 %v2181_v60, %v2184_v61 }
  0x3a   : > { %1701 = vmatpush3.bf16.msra.mxu0 %v1700_v47  ;;  %v560_v63 = vsel %vm544_vm12, 1, %v1920_v5  ;;  %v559_v0 = vsel %vm543_vm13, 1, %v1920_v5  ;;  %vm546_vm14 = vcmp.eq.s32.totalorder %v2107_v29, 1  ;;  %vm545_vm15 = vcmp.eq.s32.totalorder %v2110_v30, 1 }
  0x3b   : > { %1702 = vmatprep.subr.bf16.mxu0 %v1921_v43  ;;  %v1712_v8 = vpack.c.bf16 %v2194_v1, %v2197_v7  ;;  %v562_v11 = vsel %vm546_vm14, 1, %v1920_v5  ;;  %v561_v12 = vsel %vm545_vm15, 1, %v1920_v5  ;;  %vm668_vm0 = vcmp.eq.s32.totalorder %v2051_v6, 2 }
  0x3c   : > { %455 = vperm.xlu1 %1787, %v420_v23   ;;  %452 = vperm.xlu0 %1786, %v419_v24   ;;  %vm667_vm1 = vcmp.eq.s32.totalorder %v2040_v3, 2  ;;  %vm1922_vm2 = vmmov 0   ;;  %v1923_v19 = vmov 0.0   ;;  %v1715_v20 = vpack.c.bf16 %v2207_v15, %v2210_v16 }
  0x3d   : > { %1693 = vmatprep.mubr.msk.f32.mxu0 %vm1922_vm2, %v1923_v19  ;;  %v313_v23 = vlaneseq  ;;  %v684_v24 = vsel %vm668_vm0, 1, %v1920_v5  ;;  %vm670_vm3 = vcmp.eq.s32.totalorder %v2043_v4, 2  ;;  %vm669_vm4 = vcmp.eq.s32.totalorder %v2037_v2, 2 }
  0x3e   : > { %1704 = vmatpush3.bf16.msra.mxu0 %v1703_v52  ;;  %vm672_vm5 = vcmp.eq.s32.totalorder %v2057_v9, 2  ;;  %vm671_vm6 = vcmp.eq.s32.totalorder %v2060_v10, 2  ;;  %vm674_vm8 = vcmp.eq.s32.totalorder %v2067_v13, 2  ;;  %vm673_vm9 = vcmp.eq.s32.totalorder %v2070_v14, 2 }
  0x3f   : > { %1705 = vmatprep.subr.bf16.mxu0 %v1921_v43  ;;  %vm676_vm10 = vcmp.eq.s32.totalorder %v2077_v17, 2  ;;  %vm675_vm11 = vcmp.eq.s32.totalorder %v2080_v18, 2  ;;  %vm678_vm12 = vcmp.eq.s32.totalorder %v2087_v21, 2  ;;  %vm677_vm13 = vcmp.eq.s32.totalorder %v2090_v22, 2 }
  0x40   : > { %461 = vperm.xlu1 %1787, %v422_v27   ;;  %458 = vperm.xlu0 %1786, %v421_v28   ;;  %v683_v27 = vsel %vm667_vm1, 1, %v1920_v5  ;;  %v2220_v28 = vld [vmem:[%s2032_s25 + $0x78] sm:$0xff]  ;;  %v692_v44 = vsel %vm676_vm10, 1, %v1920_v5  ;;  %v691_v47 = vsel %vm675_vm11, 1, %v1920_v5  ;;  %vm680_vm14 = vcmp.eq.s32.totalorder %v2097_v25, 2 }
  0x41   : > { %vm679_vm15 = vcmp.eq.s32.totalorder %v2100_v26, 2  ;;  %v696_v52 = vsel %vm680_vm14, 1, %v1920_v5  ;;  %vm682_vm0 = vcmp.eq.s32.totalorder %v2107_v29, 2  ;;  %vm681_vm1 = vcmp.eq.s32.totalorder %v2110_v30, 2 }
  0x42   : > { %1707 = vmatpush3.bf16.msra.mxu0 %v1706_v57  ;;  %v697_v57 = vsel %vm681_vm1, 1, %v1920_v5  ;;  %vm804_vm2 = vcmp.eq.s32.totalorder %v2051_v6, 3  ;;  %vm812_vm10 = vcmp.eq.s32.totalorder %v2077_v17, 3  ;;  %vm811_vm11 = vcmp.eq.s32.totalorder %v2080_v18, 3 }
  0x43   : > { %1708 = vmatprep.subr.bf16.mxu0 %v1921_v43  ;;  %v828_v19 = vsel %vm812_vm10, 1, %v1920_v5  ;;  %vm816_vm14 = vcmp.eq.s32.totalorder %v2097_v25, 3  ;;  %vm817_vm1 = vcmp.eq.s32.totalorder %v2110_v30, 3  ;;  %vm948_vm10 = vcmp.eq.s32.totalorder %v2077_v17, 4 }
  0x44   : > { %467 = vperm.xlu1 %1787, %v424_v31   ;;  %464 = vperm.xlu0 %1786, %v423_v32   ;;  %v2223_v31 = vld [vmem:[%s2032_s25 + $0x70] sm:$0xff] }
  0x45   : > { %v1718_v32 = vpack.c.bf16 %v2220_v28, %v2223_v31 }
  0x46   : > { %1710 = vmatpush3.bf16.msra.mxu0 %v1709_v62 }
  0x47   : > { %1711 = vmatprep.subr.bf16.mxu0 %v1921_v43 }
  0x48   : > { %473 = vperm.xlu1 %1787, %v426_v33   ;;  %470 = vperm.xlu0 %1786, %v425_v34   ;;  %v314_v33 = vshrl.u32 %v313_v23, 7  ;;  %v1635_v34 = vld [vmem:[%s244_s13] ss:$0 sm:$0xff] }
  0x4a   : > { %1713 = vmatpush3.bf16.msra.mxu0 %v1712_v8  ;;  %vm319_vm7 = vcmp.eq.s32.totalorder %v314_v33, %v1635_v34  ;;  %v833_v34 = vsel %vm817_vm1, 1, %v1920_v5  ;;  %vm953_vm1 = vcmp.eq.s32.totalorder %v2110_v30, 4 }
  0x4b   : > { %1714 = vmatprep.subr.bf16.mxu0 %v1921_v43 }
  0x4c   : > { %567 = vperm.xlu1 %1787, %v548_v35   ;;  %564 = vperm.xlu0 %1786, %v547_v36   ;;  %v686_v35 = vsel %vm670_vm3, 1, %v1920_v5  ;;  %v685_v36 = vsel %vm669_vm4, 1, %v1920_v5  ;;  %vm803_vm3 = vcmp.eq.s32.totalorder %v2040_v3, 3  ;;  %vm806_vm4 = vcmp.eq.s32.totalorder %v2043_v4, 3 }
  0x4d   : > { %v822_v62 = vsel %vm806_vm4, 1, %v1920_v5  ;;  %vm942_vm4 = vcmp.eq.s32.totalorder %v2043_v4, 4 }
  0x4e   : > { %1716 = vmatpush3.bf16.msra.mxu0 %v1715_v20  ;;  %v827_v20 = vsel %vm811_vm11, 1, %v1920_v5  ;;  %vm947_vm11 = vcmp.eq.s32.totalorder %v2080_v18, 4 }
  0x4f   : > { %1717 = vmatprep.subr.bf16.mxu0 %v1921_v43  ;;  %v689_v43 = vsel %vm673_vm9, 1, %v1920_v5  ;;  %vm809_vm9 = vcmp.eq.s32.totalorder %v2070_v14, 3 }
  0x50   : > { %573 = vperm.xlu1 %1787, %v550_v37   ;;  %570 = vperm.xlu0 %1786, %v549_v38   ;;  %v688_v37 = vsel %vm672_vm5, 1, %v1920_v5  ;;  %v687_v38 = vsel %vm671_vm6, 1, %v1920_v5  ;;  %vm805_vm5 = vcmp.eq.s32.totalorder %v2037_v2, 3  ;;  %vm808_vm6 = vcmp.eq.s32.totalorder %v2057_v9, 3 }
  0x52   : > { %1719 = vmatpush3.bf16.msra.mxu0 %v1718_v32 }
  0x54   : > { %579 = vperm.xlu1 %1787, %v552_v41   ;;  %576 = vperm.xlu0 %1786, %v551_v42   ;;  %v1924_v41 = vmov 1.0   ;;  %v690_v42 = vsel %vm674_vm8, 1, %v1920_v5  ;;  %vm810_vm8 = vcmp.eq.s32.totalorder %v2067_v13, 3 }
  0x55   : > { %1694 = vmatmul.mubr.msk.f32.vlgmr.msra.gmra.mrb[0].mxu0 %vm319_vm7, %v1924_v41  ;;  %vm807_vm7 = vcmp.eq.s32.totalorder %v2060_v10, 3  ;;  %v958_v41 = vsel %vm942_vm4, 1, %v1920_v5 }
  0x56   : > { %v823_v8 = vsel %vm807_vm7, 1, %v1920_v5  ;;  %vm943_vm7 = vcmp.eq.s32.totalorder %v2060_v10, 4 }
  0x58   : > { %585 = vperm.xlu1 %1787, %v554_v48   ;;  %582 = vperm.xlu0 %1786, %v553_v49   ;;  %v694_v48 = vsel %vm678_vm12, 1, %v1920_v5  ;;  %v693_v49 = vsel %vm677_vm13, 1, %v1920_v5  ;;  %vm814_vm12 = vcmp.eq.s32.totalorder %v2087_v21, 3  ;;  %vm813_vm13 = vcmp.eq.s32.totalorder %v2090_v22, 3 }
  0x59   : > { %v830_v23 = vsel %vm814_vm12, 1, %v1920_v5  ;;  %vm950_vm12 = vcmp.eq.s32.totalorder %v2087_v21, 4 }
  0x5c   : > { %591 = vperm.xlu1 %1787, %v556_v53   ;;  %588 = vperm.xlu0 %1786, %v555_v54   ;;  %v695_v53 = vsel %vm679_vm15, 1, %v1920_v5  ;;  %v698_v54 = vsel %vm682_vm0, 1, %v1920_v5  ;;  %vm815_vm15 = vcmp.eq.s32.totalorder %v2100_v26, 3  ;;  %vm818_vm0 = vcmp.eq.s32.totalorder %v2107_v29, 3 }
  0x5d   : > { %v831_v32 = vsel %vm815_vm15, 1, %v1920_v5  ;;  %v834_v33 = vsel %vm818_vm0, 1, %v1920_v5  ;;  %vm951_vm15 = vcmp.eq.s32.totalorder %v2100_v26, 4  ;;  %vm954_vm0 = vcmp.eq.s32.totalorder %v2107_v29, 4 }
  0x60   : > { %597 = vperm.xlu1 %1787, %v558_v58   ;;  %594 = vperm.xlu0 %1786, %v557_v59   ;;  %v820_v58 = vsel %vm804_vm2, 1, %v1920_v5  ;;  %v819_v59 = vsel %vm803_vm3, 1, %v1920_v5  ;;  %vm940_vm2 = vcmp.eq.s32.totalorder %v2051_v6, 4  ;;  %vm939_vm3 = vcmp.eq.s32.totalorder %v2040_v3, 4 }
  0x64   : > { %603 = vperm.xlu1 %1787, %v560_v63   ;;  %600 = vperm.xlu0 %1786, %v559_v0   ;;  %v821_v63 = vsel %vm805_vm5, 1, %v1920_v5  ;;  %v824_v0 = vsel %vm808_vm6, 1, %v1920_v5  ;;  %vm941_vm5 = vcmp.eq.s32.totalorder %v2037_v2, 4  ;;  %vm944_vm6 = vcmp.eq.s32.totalorder %v2057_v9, 4 }
  0x68   : > { %609 = vperm.xlu1 %1787, %v562_v11   ;;  %606 = vperm.xlu0 %1786, %v561_v12   ;;  %v826_v11 = vsel %vm810_vm8, 1, %v1920_v5  ;;  %v825_v12 = vsel %vm809_vm9, 1, %v1920_v5  ;;  %vm946_vm8 = vcmp.eq.s32.totalorder %v2067_v13, 4  ;;  %vm945_vm9 = vcmp.eq.s32.totalorder %v2070_v14, 4 }
  0x6c   : > { %703 = vperm.xlu1 %1787, %v684_v24   ;;  %700 = vperm.xlu0 %1786, %v683_v27   ;;  %v829_v24 = vsel %vm813_vm13, 1, %v1920_v5  ;;  %v832_v27 = vsel %vm816_vm14, 1, %v1920_v5  ;;  %vm949_vm13 = vcmp.eq.s32.totalorder %v2090_v22, 4  ;;  %vm952_vm14 = vcmp.eq.s32.totalorder %v2097_v25, 4 }
  0x70   : > { %709 = vperm.xlu1 %1787, %v686_v35   ;;  %706 = vperm.xlu0 %1786, %v685_v36   ;;  %v956_v35 = vsel %vm940_vm2, 1, %v1920_v5  ;;  %v955_v36 = vsel %vm939_vm3, 1, %v1920_v5 }
  0x74   : > { %715 = vperm.xlu1 %1787, %v688_v37   ;;  %712 = vperm.xlu0 %1786, %v687_v38  }
  0x78   : > { %721 = vperm.xlu1 %1787, %v690_v42   ;;  %718 = vperm.xlu0 %1786, %v689_v43   ;;  %v957_v42 = vsel %vm941_vm5, 1, %v1920_v5 }
  0x7c   : > { %727 = vperm.xlu1 %1787, %v692_v44   ;;  %724 = vperm.xlu0 %1786, %v691_v47   ;;  %v960_v47 = vsel %vm944_vm6, 1, %v1920_v5 }
  0x80   : > { %733 = vperm.xlu1 %1787, %v694_v48   ;;  %730 = vperm.xlu0 %1786, %v693_v49   ;;  %v959_v48 = vsel %vm943_vm7, 1, %v1920_v5 }
  0x84   : > { %739 = vperm.xlu1 %1787, %v696_v52   ;;  %736 = vperm.xlu0 %1786, %v695_v53   ;;  %v962_v53 = vsel %vm946_vm8, 1, %v1920_v5 }
  0x88   : > { %745 = vperm.xlu1 %1787, %v698_v54   ;;  %742 = vperm.xlu0 %1786, %v697_v57   ;;  %v961_v54 = vsel %vm945_vm9, 1, %v1920_v5 }
  0x8c   : > { %839 = vperm.xlu1 %1787, %v820_v58   ;;  %836 = vperm.xlu0 %1786, %v819_v59   ;;  %v964_v59 = vsel %vm948_vm10, 1, %v1920_v5 }
  0x90   : > { %845 = vperm.xlu1 %1787, %v822_v62   ;;  %842 = vperm.xlu0 %1786, %v821_v63   ;;  %v963_v62 = vsel %vm947_vm11, 1, %v1920_v5 }
  0x94   : > { %851 = vperm.xlu1 %1787, %v824_v0   ;;  %848 = vperm.xlu0 %1786, %v823_v8   ;;  %v966_v8 = vsel %vm950_vm12, 1, %v1920_v5 }
  0x98   : > { %857 = vperm.xlu1 %1787, %v826_v11   ;;  %854 = vperm.xlu0 %1786, %v825_v12   ;;  %v965_v11 = vsel %vm949_vm13, 1, %v1920_v5  ;;  %v968_v12 = vsel %vm952_vm14, 1, %v1920_v5 }
  0x9c   : > { %863 = vperm.xlu1 %1787, %v828_v19   ;;  %860 = vperm.xlu0 %1786, %v827_v20   ;;  %v967_v19 = vsel %vm951_vm15, 1, %v1920_v5  ;;  %v970_v20 = vsel %vm954_vm0, 1, %v1920_v5  ;;  %vm1076_vm0 = vcmp.eq.s32.totalorder %v2051_v6, 5 }
  0xa0   : > { %869 = vperm.xlu1 %1787, %v830_v23   ;;  %866 = vperm.xlu0 %1786, %v829_v24   ;;  %v969_v23 = vsel %vm953_vm1, 1, %v1920_v5  ;;  %vm1075_vm1 = vcmp.eq.s32.totalorder %v2040_v3, 5 }
  0xa4   : > { %875 = vperm.xlu1 %1787, %v832_v27   ;;  %872 = vperm.xlu0 %1786, %v831_v32  }
  0xa8   : > { %881 = vperm.xlu1 %1787, %v834_v33   ;;  %878 = vperm.xlu0 %1786, %v833_v34  }
  0xab   : > { %v2297_v37 = vpop.permute.xlu1 %434  ;;  %v2299_v38 = vpop.permute.xlu0 %428 }
  0xac   : > { %975 = vperm.xlu1 %1787, %v956_v35   ;;  %972 = vperm.xlu0 %1786, %v955_v36   ;;  %vm477_vm4 = vcmp.eq.s32.totalorder %v2297_v37, 1  ;;  %vm475_vm5 = vcmp.eq.s32.totalorder %v2299_v38, 1 }
  0xad   : > { %v493_v34 = vsel %vm477_vm4, %v2142_v45, -inf  ;;  %v491_v35 = vsel %vm475_vm5, %v2129_v39, -inf  ;;  %vm1078_vm4 = vcmp.eq.s32.totalorder %v2043_v4, 5  ;;  %vm1077_vm5 = vcmp.eq.s32.totalorder %v2037_v2, 5 }
  0xaf   : > { %v438_v43 = vpop.permute.xlu1 %437  ;;  %v432_v44 = vpop.permute.xlu0 %431 }
  0xb0   : > { %981 = vperm.xlu1 %1787, %v958_v41   ;;  %978 = vperm.xlu0 %1786, %v957_v42   ;;  %vm478_vm6 = vcmp.eq.s32.totalorder %v438_v43, 1  ;;  %vm476_vm7 = vcmp.eq.s32.totalorder %v432_v44, 1 }
  0xb1   : > { %v494_v36 = vsel %vm478_vm6, %v2145_v46, -inf  ;;  %v492_v41 = vsel %vm476_vm7, %v2132_v40, -inf  ;;  %vm1080_vm6 = vcmp.eq.s32.totalorder %v2057_v9, 5  ;;  %vm1079_vm7 = vcmp.eq.s32.totalorder %v2060_v10, 5 }
  0xb3   : > { %v444_v49 = vpop.permute.xlu1 %443  ;;  %v441_v52 = vpop.permute.xlu0 %440 }
  0xb4   : > { %987 = vperm.xlu1 %1787, %v960_v47   ;;  %984 = vperm.xlu0 %1786, %v959_v48   ;;  %vm480_vm2 = vcmp.eq.s32.totalorder %v444_v49, 1  ;;  %vm479_vm3 = vcmp.eq.s32.totalorder %v441_v52, 1 }
  0xb5   : > { %v496_v32 = vsel %vm480_vm2, %v2155_v50, -inf  ;;  %v495_v33 = vsel %vm479_vm3, %v2158_v51, -inf }
  0xb6   : > { %v508_v37 = vmax.f32 %v492_v41, %v496_v32  ;;  %v507_v48 = vmax.f32 %v491_v35, %v495_v33  ;;  %v1092_v33 = vsel %vm1076_vm0, 1, %v1920_v5  ;;  %vm1090_vm0 = vcmp.eq.s32.totalorder %v2107_v29, 5 }
  0xb7   : > { %v450_v57 = vpop.permute.xlu1 %449  ;;  %v447_v58 = vpop.permute.xlu0 %446 }
  0xb8   : > { %993 = vperm.xlu1 %1787, %v962_v53   ;;  %990 = vperm.xlu0 %1786, %v961_v54   ;;  %vm482_vm8 = vcmp.eq.s32.totalorder %v450_v57, 1  ;;  %vm481_vm9 = vcmp.eq.s32.totalorder %v447_v58, 1 }
  0xb9   : > { %v498_v42 = vsel %vm482_vm8, %v2168_v55, -inf  ;;  %v497_v47 = vsel %vm481_vm9, %v2171_v56, -inf  ;;  %vm1082_vm8 = vcmp.eq.s32.totalorder %v2067_v13, 5  ;;  %vm1081_vm9 = vcmp.eq.s32.totalorder %v2070_v14, 5 }
  0xba   : > { %v510_v44 = vmax.f32 %v494_v36, %v498_v42  ;;  %v509_v57 = vmax.f32 %v493_v34, %v497_v47  ;;  %v1091_v34 = vsel %vm1075_vm1, 1, %v1920_v5  ;;  %v1094_v47 = vsel %vm1078_vm4, 1, %v1920_v5 }
  0xbb   : > { %v456_v63 = vpop.permute.xlu1 %455  ;;  %v453_v0 = vpop.permute.xlu0 %452  ;;  %vm1089_vm1 = vcmp.eq.s32.totalorder %v2110_v30, 5 }
  0xbc   : > { %999 = vperm.xlu1 %1787, %v964_v59   ;;  %996 = vperm.xlu0 %1786, %v963_v62   ;;  %vm484_vm10 = vcmp.eq.s32.totalorder %v456_v63, 1  ;;  %vm483_vm11 = vcmp.eq.s32.totalorder %v453_v0, 1  ;;  %v1105_v29 = vsel %vm1089_vm1, 1, %v1920_v5  ;;  %vm1211_vm1 = vcmp.eq.s32.totalorder %v2040_v3, 6 }
  0xbd   : > { %v500_v49 = vsel %vm484_vm10, %v2181_v60, -inf  ;;  %v499_v38 = vsel %vm483_vm11, %v2184_v61, -inf  ;;  %vm1084_vm10 = vcmp.eq.s32.totalorder %v2077_v17, 5  ;;  %vm1083_vm11 = vcmp.eq.s32.totalorder %v2080_v18, 5 }
  0xbe   : > { %v512_v62 = vmax.f32 %v508_v37, %v500_v49  ;;  %v511_v63 = vmax.f32 %v507_v48, %v499_v38  ;;  %v1093_v37 = vsel %vm1077_vm5, 1, %v1920_v5 }
  0xbf   : > { %v462_v24 = vpop.permute.xlu1 %461  ;;  %v459_v27 = vpop.permute.xlu0 %458 }
  0xc0   : > { %1005 = vperm.xlu1 %1787, %v966_v8   ;;  %1002 = vperm.xlu0 %1786, %v965_v11   ;;  %vm486_vm12 = vcmp.eq.s32.totalorder %v462_v24, 1  ;;  %vm485_vm13 = vcmp.eq.s32.totalorder %v459_v27, 1 }
  0xc1   : > { %v502_v43 = vsel %vm486_vm12, %v2194_v1, -inf  ;;  %v501_v54 = vsel %vm485_vm13, %v2197_v7, -inf  ;;  %vm1086_vm12 = vcmp.eq.s32.totalorder %v2087_v21, 5  ;;  %vm1085_vm13 = vcmp.eq.s32.totalorder %v2090_v22, 5 }
  0xc2   : > { %v514_v0 = vmax.f32 %v510_v44, %v502_v43  ;;  %v513_v8 = vmax.f32 %v509_v57, %v501_v54  ;;  %v1095_v43 = vsel %vm1079_vm7, 1, %v1920_v5  ;;  %v1101_v21 = vsel %vm1085_vm13, 1, %v1920_v5 }
  0xc3   : > { %v468_v52 = vpop.permute.xlu1 %467  ;;  %v465_v53 = vpop.permute.xlu0 %464 }
  0xc4   : > { %vm488_vm14 = vcmp.eq.s32.totalorder %v468_v52, 1  ;;  %vm487_vm15 = vcmp.eq.s32.totalorder %v465_v53, 1  ;;  %1011 = vperm.xlu1 %1787, %v968_v12   ;;  %1008 = vperm.xlu0 %1786, %v967_v19   ;;  %v1096_v53 = vsel %vm1080_vm6, 1, %v1920_v5 }
  0xc5   : > { %v504_v58 = vsel %vm488_vm14, %v2207_v15, -inf  ;;  %v503_v59 = vsel %vm487_vm15, %v2210_v16, -inf  ;;  %vm1088_vm14 = vcmp.eq.s32.totalorder %v2097_v25, 5  ;;  %vm1087_vm15 = vcmp.eq.s32.totalorder %v2100_v26, 5 }
  0xc6   : > { %v516_v27 = vmax.f32 %v512_v62, %v504_v58  ;;  %v515_v32 = vmax.f32 %v511_v63, %v503_v59  ;;  %v1098_v59 = vsel %vm1082_vm8, 1, %v1920_v5  ;;  %v1097_v62 = vsel %vm1081_vm9, 1, %v1920_v5 }
  0xc7   : > { %v474_v11 = vpop.permute.xlu1 %473  ;;  %v471_v24 = vpop.permute.xlu0 %470  ;;  %v1104_v22 = vsel %vm1088_vm14, 1, %v1920_v5  ;;  %v1103_v25 = vsel %vm1087_vm15, 1, %v1920_v5  ;;  %v1106_v26 = vsel %vm1090_vm0, 1, %v1920_v5  ;;  %vm1212_vm0 = vcmp.eq.s32.totalorder %v2051_v6, 6 }
  0xc8   : > { %vm490_vm2 = vcmp.eq.s32.totalorder %v474_v11, 1  ;;  %vm489_vm3 = vcmp.eq.s32.totalorder %v471_v24, 1  ;;  %1017 = vperm.xlu1 %1787, %v970_v20   ;;  %1014 = vperm.xlu0 %1786, %v969_v23   ;;  %v519_v20 = vmax.f32 %v515_v32, %v516_v27  ;;  %v528_v24 = vld [vmem:[#allocation4] sm:$0x1]  ;;  %v1100_v27 = vsel %vm1084_vm10, 1, %v1920_v5 }
  0xc9   : > { %v506_v12 = vsel %vm490_vm2, %v2220_v28, -inf  ;;  %v505_v19 = vsel %vm489_vm3, %v2223_v31, -inf  ;;  %v1099_v32 = vsel %vm1083_vm11, 1, %v1920_v5  ;;  %v1227_v6 = vsel %vm1211_vm1, 1, %v1920_v5 }
  0xca   : > { %v518_v35 = vmax.f32 %v514_v0, %v506_v12  ;;  %v517_v36 = vmax.f32 %v513_v8, %v505_v19 }
  0xcb   : > { %v2359_v41 = vpop.permute.xlu1 %567  ;;  %v2361_v42 = vpop.permute.xlu0 %564 }
  0xcc   : > { %v520_v23 = vmax.f32 %v517_v36, %v518_v35  ;;  %1111 = vperm.xlu1 %1787, %v1092_v33   ;;  %1108 = vperm.xlu0 %1786, %v1091_v34   ;;  %v1102_v35 = vsel %vm1086_vm12, 1, %v1920_v5  ;;  %vm612_vm4 = vcmp.eq.s32.totalorder %v2359_v41, 1  ;;  %vm611_vm5 = vcmp.eq.s32.totalorder %v2361_v42, 1 }
  0xce   : > { %v521_v48 = vmax.f32 %v519_v20, %v520_v23 }
  0xcf   : > { %v2367_v49 = vpop.permute.xlu1 %573  ;;  %v2369_v38 = vpop.permute.xlu0 %570 }
  0xd0   : > { %v522_v52 = vrot.slane %v521_v48, 4  ;;  %1117 = vperm.xlu1 %1787, %v1094_v47   ;;  %1114 = vperm.xlu0 %1786, %v1093_v37   ;;  %vm614_vm6 = vcmp.eq.s32.totalorder %v2367_v49, 1  ;;  %vm613_vm7 = vcmp.eq.s32.totalorder %v2369_v38, 1  ;;  %v628_v47 = vsel %vm612_vm4, %v2132_v40, -inf }
  0xd1   : > { %v627_v37 = vsel %vm611_vm5, %v2129_v39, -inf  ;;  %vm1214_vm4 = vcmp.eq.s32.totalorder %v2043_v4, 6  ;;  %vm1213_vm5 = vcmp.eq.s32.totalorder %v2037_v2, 6 }
  0xd2   : > { %v523_v54 = vmax.f32 %v521_v48, %v522_v52  ;;  %v630_v48 = vsel %vm614_vm6, %v2145_v46, -inf  ;;  %v629_v52 = vsel %vm613_vm7, %v2142_v45, -inf  ;;  %vm1216_vm6 = vcmp.eq.s32.totalorder %v2057_v9, 6 }
  0xd3   : > { %v580_v44 = vpop.permute.xlu1 %579  ;;  %v577_v57 = vpop.permute.xlu0 %576  ;;  %vm1215_vm7 = vcmp.eq.s32.totalorder %v2060_v10, 6 }
  0xd4   : > { %v524_v58 = vrot.slane %v523_v54, 2  ;;  %1123 = vperm.xlu1 %1787, %v1096_v53   ;;  %1120 = vperm.xlu0 %1786, %v1095_v43   ;;  %vm616_vm2 = vcmp.eq.s32.totalorder %v580_v44, 1  ;;  %vm615_vm3 = vcmp.eq.s32.totalorder %v577_v57, 1 }
  0xd5   : > { %v632_v20 = vsel %vm616_vm2, %v2155_v50, -inf  ;;  %v631_v23 = vsel %vm615_vm3, %v2158_v51, -inf }
  0xd6   : > { %v525_v63 = vmax.f32 %v523_v54, %v524_v58  ;;  %v644_v43 = vmax.f32 %v628_v47, %v632_v20  ;;  %v643_v54 = vmax.f32 %v627_v37, %v631_v23  ;;  %v1229_v20 = vsel %vm1213_vm5, 1, %v1920_v5 }
  0xd7   : > { %v586_v0 = vpop.permute.xlu1 %585  ;;  %v583_v8 = vpop.permute.xlu0 %582  ;;  %v1232_v37 = vsel %vm1216_vm6, 1, %v1920_v5 }
  0xd8   : > { %v526_v11 = vrot.slane %v525_v63, 1  ;;  %1129 = vperm.xlu1 %1787, %v1098_v59   ;;  %1126 = vperm.xlu0 %1786, %v1097_v62   ;;  %vm618_vm8 = vcmp.eq.s32.totalorder %v586_v0, 1  ;;  %vm617_vm9 = vcmp.eq.s32.totalorder %v583_v8, 1 }
  0xd9   : > { %v634_v53 = vsel %vm618_vm8, %v2168_v55, -inf  ;;  %v633_v41 = vsel %vm617_vm9, %v2171_v56, -inf  ;;  %vm1218_vm8 = vcmp.eq.s32.totalorder %v2067_v13, 6  ;;  %vm1217_vm9 = vcmp.eq.s32.totalorder %v2070_v14, 6 }
  0xda   : > { %v527_v12 = vmax.f32 %v525_v63, %v526_v11  ;;  %v646_v38 = vmax.f32 %v630_v48, %v634_v53  ;;  %v645_v62 = vmax.f32 %v629_v52, %v633_v41  ;;  %v1231_v48 = vsel %vm1215_vm7, 1, %v1920_v5 }
  0xdb   : > { %v592_v19 = vpop.permute.xlu1 %591  ;;  %v589_v33 = vpop.permute.xlu0 %588  ;;  %v1234_v10 = vsel %vm1218_vm8, 1, %v1920_v5 }
  0xdc   : > { %v529_v34 = vmax.f32 %v528_v24, %v527_v12  ;;  %1135 = vperm.xlu1 %1787, %v1100_v27   ;;  %1132 = vperm.xlu0 %1786, %v1099_v32   ;;  %vm620_vm10 = vcmp.eq.s32.totalorder %v592_v19, 1  ;;  %vm619_vm11 = vcmp.eq.s32.totalorder %v589_v33, 1 }
  0xdd   : > { %v636_v42 = vsel %vm620_vm10, %v2181_v60, -inf  ;;  %v635_v44 = vsel %vm619_vm11, %v2184_v61, -inf  ;;  %vm1220_vm10 = vcmp.eq.s32.totalorder %v2077_v17, 6  ;;  %vm1219_vm11 = vcmp.eq.s32.totalorder %v2080_v18, 6  ;;  %v1791_v18 = vld [vmem:[%s2027_s17 + $0x10] sm:$0xff] }
  0xde   : > { %530 = vst [vmem:[#allocation4] sm:$0x1] %v529_v34  ;;  %v648_v8 = vmax.f32 %v644_v43, %v636_v42  ;;  %v647_v11 = vmax.f32 %v643_v54, %v635_v44  ;;  %v1233_v43 = vsel %vm1217_vm9, 1, %v1920_v5  ;;  %v664_v44 = vld [vmem:[#allocation4 + $0x1] sm:$0x1] }
  0xdf   : > { %v598_v30 = vpop.permute.xlu1 %597  ;;  %v595_v36 = vpop.permute.xlu0 %594 }
  0xe0   : > { %1141 = vperm.xlu1 %1787, %v1102_v35   ;;  %1138 = vperm.xlu0 %1786, %v1101_v21   ;;  %vm622_vm12 = vcmp.eq.s32.totalorder %v598_v30, 1  ;;  %vm621_vm13 = vcmp.eq.s32.totalorder %v595_v36, 1  ;;  %v1228_v21 = vsel %vm1212_vm0, 1, %v1920_v5  ;;  %v1230_v36 = vsel %vm1214_vm4, 1, %v1920_v5 }
  0xe1   : > { %v638_v49 = vsel %vm622_vm12, %v2194_v1, -inf  ;;  %v637_v59 = vsel %vm621_vm13, %v2197_v7, -inf }
  0xe2   : > { %v650_v24 = vmax.f32 %v646_v38, %v638_v49  ;;  %v649_v27 = vmax.f32 %v645_v62, %v637_v59  ;;  %v1788_v49 = vld [vmem:[%s2027_s17 + $0x8] sm:$0xff]  ;;  %v1789_v59 = vld [vmem:[%s2027_s17] sm:$0xff]  ;;  %v1790_v38 = vld [vmem:[%s2027_s17 + $0x18] sm:$0xff] }
  0xe3   : > { %v604_v57 = vpop.permute.xlu1 %603  ;;  %v601_v58 = vpop.permute.xlu0 %600  ;;  %vm1348_vm12 = vcmp.eq.s32.totalorder %v1788_v49, 7  ;;  %vm1347_vm13 = vcmp.eq.s32.totalorder %v1789_v59, 7  ;;  %v1798_v49 = vld [vmem:[%s2027_s17 + $0x48] sm:$0xff]  ;;  %v1799_v59 = vld [vmem:[%s2027_s17 + $0x40] sm:$0xff] }
  0xe4   : > { %vm624_vm14 = vcmp.eq.s32.totalorder %v604_v57, 1  ;;  %vm623_vm15 = vcmp.eq.s32.totalorder %v601_v58, 1  ;;  %1147 = vperm.xlu1 %1787, %v1104_v22   ;;  %1144 = vperm.xlu0 %1786, %v1103_v25   ;;  %v1236_v57 = vsel %vm1220_vm10, 1, %v1920_v5  ;;  %v1235_v58 = vsel %vm1219_vm11, 1, %v1920_v5 }
  0xe5   : > { %v640_v63 = vsel %vm624_vm14, %v2207_v15, -inf  ;;  %v639_v0 = vsel %vm623_vm15, %v2210_v16, -inf  ;;  %vm1350_vm14 = vcmp.eq.s32.totalorder %v1790_v38, 7  ;;  %vm1349_vm15 = vcmp.eq.s32.totalorder %v1791_v18, 7 }
  0xe6   : > { %v652_v19 = vmax.f32 %v648_v8, %v640_v63  ;;  %v651_v33 = vmax.f32 %v647_v11, %v639_v0  ;;  %v1792_v0 = vld [vmem:[%s2027_s17 + $0x28] sm:$0xff]  ;;  %v1793_v8 = vld [vmem:[%s2027_s17 + $0x20] sm:$0xff] }
  0xe7   : > { %v610_v32 = vpop.permute.xlu1 %609  ;;  %v607_v12 = vpop.permute.xlu0 %606  ;;  %vm1352_vm0 = vcmp.eq.s32.totalorder %v1792_v0, 7  ;;  %vm1351_vm1 = vcmp.eq.s32.totalorder %v1793_v8, 7 }
  0xe8   : > { %vm626_vm2 = vcmp.eq.s32.totalorder %v610_v32, 1  ;;  %vm625_vm3 = vcmp.eq.s32.totalorder %v607_v12, 1  ;;  %1153 = vperm.xlu1 %1787, %v1106_v26   ;;  %1150 = vperm.xlu0 %1786, %v1105_v29   ;;  %v655_v26 = vmax.f32 %v651_v33, %v652_v19  ;;  %v1366_v32 = vsel %vm1350_vm14, 1, %v1920_v5 }
  0xe9   : > { %v642_v34 = vsel %vm626_vm2, %v2220_v28, -inf  ;;  %v641_v35 = vsel %vm625_vm3, %v2223_v31, -inf  ;;  %v1365_v12 = vsel %vm1349_vm15, 1, %v1920_v5  ;;  %v1368_v19 = vsel %vm1352_vm0, 1, %v1920_v5 }
  0xea   : > { %v654_v22 = vmax.f32 %v650_v24, %v642_v34  ;;  %v653_v3 = vmax.f32 %v649_v27, %v641_v35  ;;  %v1364_v24 = vsel %vm1348_vm12, 1, %v1920_v5  ;;  %v1363_v27 = vsel %vm1347_vm13, 1, %v1920_v5 }
  0xeb   : > { %v2429_v25 = vpop.permute.xlu1 %703  ;;  %v2431_v30 = vpop.permute.xlu0 %700  ;;  %v1367_v33 = vsel %vm1351_vm1, 1, %v1920_v5 }
  0xec   : > { %v656_v29 = vmax.f32 %v653_v3, %v654_v22  ;;  %1247 = vperm.xlu1 %1787, %v1228_v21   ;;  %1244 = vperm.xlu0 %1786, %v1227_v6   ;;  %vm748_vm4 = vcmp.eq.s32.totalorder %v2429_v25, 1  ;;  %vm747_vm5 = vcmp.eq.s32.totalorder %v2431_v30, 1 }
  0xed   : > { %v764_v22 = vsel %vm748_vm4, %v2132_v40, -inf  ;;  %v763_v3 = vsel %vm747_vm5, %v2129_v39, -inf }
  0xee   : > { %v657_v23 = vmax.f32 %v655_v26, %v656_v29 }
  0xef   : > { %v2437_v4 = vpop.permute.xlu1 %709  ;;  %v2439_v2 = vpop.permute.xlu0 %706 }
  0xf0   : > { %v658_v47 = vrot.slane %v657_v23, 4  ;;  %1253 = vperm.xlu1 %1787, %v1230_v36   ;;  %1250 = vperm.xlu0 %1786, %v1229_v20   ;;  %vm750_vm6 = vcmp.eq.s32.totalorder %v2437_v4, 1  ;;  %vm749_vm7 = vcmp.eq.s32.totalorder %v2439_v2, 1 }
  0xf2   : > { %v659_v52 = vmax.f32 %v657_v23, %v658_v47  ;;  %v1795_v47 = vld [vmem:[%s2027_s17 + $0x30] sm:$0xff] }
  0xf3   : > { %v716_v53 = vpop.permute.xlu1 %715  ;;  %v713_v9 = vpop.permute.xlu0 %712  ;;  %vm1353_vm1 = vcmp.eq.s32.totalorder %v1795_v47, 7  ;;  %v2551_v47 = vld [vmem:[%s2032_s25] sm:$0xff] }
  0xf4   : > { %v660_v41 = vrot.slane %v659_v52, 2  ;;  %1259 = vperm.xlu1 %1787, %v1232_v37   ;;  %1256 = vperm.xlu0 %1786, %v1231_v48   ;;  %vm752_vm2 = vcmp.eq.s32.totalorder %v716_v53, 1  ;;  %vm751_vm3 = vcmp.eq.s32.totalorder %v713_v9, 1 }
  0xf5   : > { %v768_v21 = vsel %vm752_vm2, %v2155_v50, -inf  ;;  %v767_v6 = vsel %vm751_vm3, %v2158_v51, -inf  ;;  %v766_v50 = vsel %vm750_vm6, %v2145_v46, -inf  ;;  %v765_v51 = vsel %vm749_vm7, %v2142_v45, -inf }
  0xf6   : > { %v661_v54 = vmax.f32 %v659_v52, %v660_v41  ;;  %v780_v25 = vmax.f32 %v764_v22, %v768_v21  ;;  %v779_v29 = vmax.f32 %v763_v3, %v767_v6  ;;  %v1369_v41 = vsel %vm1353_vm1, 1, %v1920_v5  ;;  %v800_v6 = vld [vmem:[#allocation4 + $0x2] sm:$0x1] }
  0xf7   : > { %v722_v13 = vpop.permute.xlu1 %721  ;;  %v719_v14 = vpop.permute.xlu0 %718  ;;  %vm1356_vm6 = vcmp.eq.s32.totalorder %v1798_v49, 7  ;;  %vm1355_vm7 = vcmp.eq.s32.totalorder %v1799_v59, 7 }
  0xf8   : > { %v662_v42 = vrot.slane %v661_v54, 1  ;;  %1265 = vperm.xlu1 %1787, %v1234_v10   ;;  %1262 = vperm.xlu0 %1786, %v1233_v43   ;;  %vm754_vm8 = vcmp.eq.s32.totalorder %v722_v13, 1  ;;  %vm753_vm9 = vcmp.eq.s32.totalorder %v719_v14, 1  ;;  %v1797_v13 = vld [vmem:[%s2027_s17 + $0x50] sm:$0xff] }
  0xf9   : > { %v770_v26 = vsel %vm754_vm8, %v2168_v55, -inf  ;;  %v769_v40 = vsel %vm753_vm9, %v2171_v56, -inf  ;;  %vm1221_vm5 = vcmp.eq.s32.totalorder %v1797_v13, 6  ;;  %vm1357_vm9 = vcmp.eq.s32.totalorder %v1797_v13, 7  ;;  %v2584_v13 = vld [vmem:[%s2032_s25 + $0x40] sm:$0xff] }
  0xfa   : > { %v663_v17 = vmax.f32 %v661_v54, %v662_v42  ;;  %v782_v55 = vmax.f32 %v766_v50, %v770_v26  ;;  %v781_v56 = vmax.f32 %v765_v51, %v769_v40  ;;  %v1796_v54 = vld [vmem:[%s2027_s17 + $0x58] sm:$0xff]  ;;  %v1803_v51 = vld [vmem:[%s2027_s17 + $0x70] sm:$0xff] }
  0xfb   : > { %v728_v62 = vpop.permute.xlu1 %727  ;;  %v725_v63 = vpop.permute.xlu0 %724  ;;  %vm1222_vm4 = vcmp.eq.s32.totalorder %v1796_v54, 6  ;;  %vm1358_vm8 = vcmp.eq.s32.totalorder %v1796_v54, 7  ;;  %v1802_v50 = vld [vmem:[%s2027_s17 + $0x78] sm:$0xff]  ;;  %vm1361_vm1 = vcmp.eq.s32.totalorder %v1803_v51, 7 }
  0xfc   : > { %v665_v11 = vmax.f32 %v664_v44, %v663_v17  ;;  %1271 = vperm.xlu1 %1787, %v1236_v57   ;;  %1268 = vperm.xlu0 %1786, %v1235_v58   ;;  %vm756_vm10 = vcmp.eq.s32.totalorder %v728_v62, 1  ;;  %vm755_vm11 = vcmp.eq.s32.totalorder %v725_v63, 1  ;;  %v1237_v57 = vsel %vm1221_vm5, 1, %v1920_v5 }
  0xfd   : > { %v772_v39 = vsel %vm756_vm10, %v2181_v60, -inf  ;;  %v771_v30 = vsel %vm755_vm11, %v2184_v61, -inf  ;;  %v1794_v61 = vld [vmem:[%s2027_s17 + $0x38] sm:$0xff]  ;;  %v1372_v62 = vsel %vm1356_vm6, 1, %v1920_v5  ;;  %v1371_v63 = vsel %vm1355_vm7, 1, %v1920_v5 }
  0xfe   : > { %666 = vst [vmem:[#allocation4 + $0x1] sm:$0x1] %v665_v11  ;;  %v784_v4 = vmax.f32 %v780_v25, %v772_v39  ;;  %v783_v2 = vmax.f32 %v779_v29, %v771_v30  ;;  %vm1354_vm0 = vcmp.eq.s32.totalorder %v1794_v61, 7 }
  0xff   : > { %v734_v34 = vpop.permute.xlu1 %733  ;;  %v731_v35 = vpop.permute.xlu0 %730  ;;  %v1370_v9 = vsel %vm1354_vm0, 1, %v1920_v5  ;;  %vm1362_vm0 = vcmp.eq.s32.totalorder %v1802_v50, 7 }
 0x100   : > { %1383 = vperm.xlu1 %1787, %v1364_v24   ;;  %1380 = vperm.xlu0 %1786, %v1363_v27   ;;  %vm758_vm12 = vcmp.eq.s32.totalorder %v734_v34, 1  ;;  %vm757_vm13 = vcmp.eq.s32.totalorder %v731_v35, 1  ;;  %v1374_v27 = vsel %vm1358_vm8, 1, %v1920_v5 }
 0x101   : > { %v774_v20 = vsel %vm758_vm12, %v2194_v1, -inf  ;;  %v773_v45 = vsel %vm757_vm13, %v2197_v7, -inf  ;;  %vm1226_vm12 = vcmp.eq.s32.totalorder %v1802_v50, 6  ;;  %vm1225_vm13 = vcmp.eq.s32.totalorder %v1803_v51, 6 }
 0x102   : > { %v786_v37 = vmax.f32 %v782_v55, %v774_v20  ;;  %v785_v1 = vmax.f32 %v781_v56, %v773_v45  ;;  %v1242_v39 = vsel %vm1226_vm12, 1, %v1920_v5  ;;  %v1241_v30 = vsel %vm1225_vm13, 1, %v1920_v5 }
 0x103   : > { %v740_v36 = vpop.permute.xlu1 %739  ;;  %v737_v46 = vpop.permute.xlu0 %736  ;;  %v1378_v20 = vsel %vm1362_vm0, 1, %v1920_v5  ;;  %v1377_v45 = vsel %vm1361_vm1, 1, %v1920_v5 }
 0x104   : > { %vm760_vm14 = vcmp.eq.s32.totalorder %v740_v36, 1  ;;  %vm759_vm15 = vcmp.eq.s32.totalorder %v737_v46, 1  ;;  %1389 = vperm.xlu1 %1787, %v1366_v32   ;;  %1386 = vperm.xlu0 %1786, %v1365_v12   ;;  %v1373_v32 = vsel %vm1357_vm9, 1, %v1920_v5 }
 0x105   : > { %v776_v23 = vsel %vm760_vm14, %v2207_v15, -inf  ;;  %v775_v60 = vsel %vm759_vm15, %v2210_v16, -inf }
 0x106   : > { %v788_v52 = vmax.f32 %v784_v4, %v776_v23  ;;  %v787_v53 = vmax.f32 %v783_v2, %v775_v60  ;;  %v2535_v23 = vld [vmem:[%s2032_s25 + $0x28] sm:$0xff]  ;;  %v2540_v4 = vld [vmem:[%s2032_s25 + $0x20] sm:$0xff] }
 0x107   : > { %v746_v7 = vpop.permute.xlu1 %745  ;;  %v743_v48 = vpop.permute.xlu0 %742  ;;  %v2545_v2 = vld [vmem:[%s2032_s25 + $0x8] sm:$0xff] }
 0x108   : > { %vm762_vm2 = vcmp.eq.s32.totalorder %v746_v7, 1  ;;  %vm761_vm3 = vcmp.eq.s32.totalorder %v743_v48, 1  ;;  %1395 = vperm.xlu1 %1787, %v1368_v19   ;;  %1392 = vperm.xlu0 %1786, %v1367_v33   ;;  %v791_v44 = vmax.f32 %v787_v53, %v788_v52  ;;  %v1800_v19 = vld [vmem:[%s2027_s17 + $0x68] sm:$0xff]  ;;  %v1801_v33 = vld [vmem:[%s2027_s17 + $0x60] sm:$0xff]  ;;  %v2563_v48 = vld [vmem:[%s2032_s25 + $0x10] sm:$0xff] }
 0x109   : > { %v778_v15 = vsel %vm762_vm2, %v2220_v28, -inf  ;;  %v777_v16 = vsel %vm761_vm3, %v2223_v31, -inf  ;;  %v1238_v31 = vsel %vm1222_vm4, 1, %v1920_v5  ;;  %vm1224_vm10 = vcmp.eq.s32.totalorder %v1800_v19, 6  ;;  %v2569_v53 = vld [vmem:[%s2032_s25 + $0x38] sm:$0xff] }
 0x10a   : > { %v790_v10 = vmax.f32 %v786_v37, %v778_v15  ;;  %v789_v43 = vmax.f32 %v785_v1, %v777_v16  ;;  %vm1223_vm11 = vcmp.eq.s32.totalorder %v1801_v33, 6  ;;  %v1240_v22 = vsel %vm1224_vm10, 1, %v1920_v5  ;;  %v2557_v1 = vld [vmem:[%s2032_s25 + $0x18] sm:$0xff]  ;;  %v2574_v16 = vld [vmem:[%s2032_s25 + $0x30] sm:$0xff] }
 0x10b   : > { %v2502_v14 = vpop.permute.xlu1 %839  ;;  %v2504_v42 = vpop.permute.xlu0 %836  ;;  %v1239_v3 = vsel %vm1223_vm11, 1, %v1920_v5  ;;  %vm1360_vm14 = vcmp.eq.s32.totalorder %v1800_v19, 7  ;;  %vm1359_vm15 = vcmp.eq.s32.totalorder %v1801_v33, 7  ;;  %v2607_v19 = vld [vmem:[%s2032_s25 + $0x78] sm:$0xff] }
 0x10c   : > { %v792_v28 = vmax.f32 %v789_v43, %v790_v10  ;;  %1401 = vperm.xlu1 %1787, %v1370_v9   ;;  %1398 = vperm.xlu0 %1786, %v1369_v41   ;;  %v1376_v36 = vsel %vm1360_vm14, 1, %v1920_v5  ;;  %v1375_v46 = vsel %vm1359_vm15, 1, %v1920_v5  ;;  %vm884_vm4 = vcmp.eq.s32.totalorder %v2502_v14, 1  ;;  %v2579_v43 = vld [vmem:[%s2032_s25 + $0x48] sm:$0xff] }
 0x10d   : > { %vm883_vm5 = vcmp.eq.s32.totalorder %v2504_v42, 1  ;;  %v900_v61 = vsel %vm884_vm4, %v2545_v2, -inf }
 0x10e   : > { %v793_v58 = vmax.f32 %v791_v44, %v792_v28  ;;  %v899_v37 = vsel %vm883_vm5, %v2551_v47, -inf  ;;  %v2589_v28 = vld [vmem:[%s2032_s25 + $0x58] sm:$0xff] }
 0x10f   : > { %v2510_v17 = vpop.permute.xlu1 %845  ;;  %v2512_v38 = vpop.permute.xlu0 %842 }
 0x110   : > { %v794_v18 = vrot.slane %v793_v58, 4  ;;  %1277 = vperm.xlu1 %1787, %v1238_v31   ;;  %1274 = vperm.xlu0 %1786, %v1237_v57   ;;  %vm886_vm6 = vcmp.eq.s32.totalorder %v2510_v17, 1  ;;  %vm885_vm7 = vcmp.eq.s32.totalorder %v2512_v38, 1  ;;  %v2594_v57 = vld [vmem:[%s2032_s25 + $0x50] sm:$0xff]  ;;  %v2599_v17 = vld [vmem:[%s2032_s25 + $0x68] sm:$0xff] }
 0x111   : > { %v902_v7 = vsel %vm886_vm6, %v2557_v1, -inf  ;;  %v901_v52 = vsel %vm885_vm7, %v2563_v48, -inf }
 0x112   : > { %v795_v0 = vmax.f32 %v793_v58, %v794_v18  ;;  %v2603_v18 = vld [vmem:[%s2032_s25 + $0x60] sm:$0xff] }
 0x113   : > { %v852_v8 = vpop.permute.xlu1 %851  ;;  %v849_v11 = vpop.permute.xlu0 %848 }
 0x114   : > { %v796_v24 = vrot.slane %v795_v0, 2  ;;  %1407 = vperm.xlu1 %1787, %v1372_v62   ;;  %1404 = vperm.xlu0 %1786, %v1371_v63   ;;  %vm888_vm2 = vcmp.eq.s32.totalorder %v852_v8, 1  ;;  %vm887_vm3 = vcmp.eq.s32.totalorder %v849_v11, 1 }
 0x115   : > { %v904_v60 = vsel %vm888_vm2, %v2535_v23, -inf  ;;  %v903_v5 = vsel %vm887_vm3, %v2540_v4, -inf }
 0x116   : > { %v797_v12 = vmax.f32 %v795_v0, %v796_v24  ;;  %v916_v41 = vmax.f32 %v900_v61, %v904_v60  ;;  %v915_v10 = vmax.f32 %v899_v37, %v903_v5  ;;  %v936_v60 = vld [vmem:[#allocation4 + $0x3] sm:$0x1] }
 0x117   : > { %v858_v34 = vpop.permute.xlu1 %857  ;;  %v855_v35 = vpop.permute.xlu0 %854 }
 0x118   : > { %v798_v21 = vrot.slane %v797_v12, 1  ;;  %1413 = vperm.xlu1 %1787, %v1374_v27   ;;  %1410 = vperm.xlu0 %1786, %v1373_v32   ;;  %vm890_vm8 = vcmp.eq.s32.totalorder %v858_v34, 1  ;;  %vm889_vm9 = vcmp.eq.s32.totalorder %v855_v35, 1  ;;  %v2611_v34 = vld [vmem:[%s2032_s25 + $0x70] sm:$0xff] }
 0x119   : > { %v906_v15 = vsel %vm890_vm8, %v2569_v53, -inf  ;;  %v905_v9 = vsel %vm889_vm9, %v2574_v16, -inf }
 0x11a   : > { %v799_v26 = vmax.f32 %v797_v12, %v798_v21  ;;  %v918_v49 = vmax.f32 %v902_v7, %v906_v15  ;;  %v917_v59 = vmax.f32 %v901_v52, %v905_v9 }
 0x11b   : > { %v864_v40 = vpop.permute.xlu1 %863  ;;  %v861_v25 = vpop.permute.xlu0 %860 }
 0x11c   : > { %v801_v29 = vmax.f32 %v800_v6, %v799_v26  ;;  %1283 = vperm.xlu1 %1787, %v1240_v22   ;;  %1280 = vperm.xlu0 %1786, %v1239_v3   ;;  %vm892_vm10 = vcmp.eq.s32.totalorder %v864_v40, 1  ;;  %vm891_vm11 = vcmp.eq.s32.totalorder %v861_v25, 1 }
 0x11d   : > { %v908_v54 = vsel %vm892_vm10, %v2579_v43, -inf  ;;  %v907_v14 = vsel %vm891_vm11, %v2584_v13, -inf }
 0x11e   : > { %802 = vst [vmem:[#allocation4 + $0x2] sm:$0x1] %v801_v29  ;;  %v920_v63 = vmax.f32 %v916_v41, %v908_v54  ;;  %v919_v0 = vmax.f32 %v915_v10, %v907_v14 }
 0x11f   : > { %v870_v55 = vpop.permute.xlu1 %869  ;;  %v867_v56 = vpop.permute.xlu0 %866 }
 0x120   : > { %1289 = vperm.xlu1 %1787, %v1242_v39   ;;  %1286 = vperm.xlu0 %1786, %v1241_v30   ;;  %vm894_vm12 = vcmp.eq.s32.totalorder %v870_v55, 1  ;;  %vm893_vm13 = vcmp.eq.s32.totalorder %v867_v56, 1 }
 0x121   : > { %v910_v31 = vsel %vm894_vm12, %v2589_v28, -inf  ;;  %v909_v58 = vsel %vm893_vm13, %v2594_v57, -inf }
 0x122   : > { %v922_v8 = vmax.f32 %v918_v49, %v910_v31  ;;  %v921_v11 = vmax.f32 %v917_v59, %v909_v58 }
 0x123   : > { %v876_v42 = vpop.permute.xlu1 %875  ;;  %v873_v44 = vpop.permute.xlu0 %872 }
 0x124   : > { %vm896_vm14 = vcmp.eq.s32.totalorder %v876_v42, 1  ;;  %vm895_vm15 = vcmp.eq.s32.totalorder %v873_v44, 1  ;;  %1419 = vperm.xlu1 %1787, %v1376_v36   ;;  %1416 = vperm.xlu0 %1786, %v1375_v46  }
 0x125   : > { %v912_v38 = vsel %vm896_vm14, %v2599_v17, -inf  ;;  %v911_v62 = vsel %vm895_vm15, %v2603_v18, -inf }
 0x126   : > { %v924_v32 = vmax.f32 %v920_v63, %v912_v38  ;;  %v923_v12 = vmax.f32 %v919_v0, %v911_v62  ;;  %v322_v0 = vld [vmem:[#allocation2] sm:$0xff] }
 0x127   : > { %v882_v24 = vpop.permute.xlu1 %881  ;;  %v879_v27 = vpop.permute.xlu0 %878 }
 0x128   : > { %vm898_vm0 = vcmp.eq.s32.totalorder %v882_v24, 1  ;;  %vm897_vm1 = vcmp.eq.s32.totalorder %v879_v27, 1  ;;  %1425 = vperm.xlu1 %1787, %v1378_v20   ;;  %1422 = vperm.xlu0 %1786, %v1377_v45   ;;  %v927_v50 = vmax.f32 %v923_v12, %v924_v32 }
 0x129   : > { %v914_v33 = vsel %vm898_vm0, %v2607_v19, -inf  ;;  %v913_v35 = vsel %vm897_vm1, %v2611_v34, -inf }
 0x12a   : > { %v926_v21 = vmax.f32 %v922_v8, %v914_v33  ;;  %v925_v6 = vmax.f32 %v921_v11, %v913_v35  ;;  %v389_v33 = vpop.f32.mrb[0].mxu0 }
 0x12b   : > { %v976_v22 = vpop.permute.xlu1 %975  ;;  %v973_v3 = vpop.permute.xlu0 %972 }
 0x12c   : > { %v928_v51 = vmax.f32 %v925_v6, %v926_v21  ;;  %vm1020_vm4 = vcmp.eq.s32.totalorder %v976_v22, 1  ;;  %vm1019_vm5 = vcmp.eq.s32.totalorder %v973_v3, 1  ;;  %v393_v6 = vadd.f32 %v389_v33, %v322_v0  ;;  %v1695_v22 = vpop.f32.mrb[1].mxu0 }
 0x12d   : > { %v1036_v10 = vsel %vm1020_vm4, %v2545_v2, -inf  ;;  %v1035_v54 = vsel %vm1019_vm5, %v2551_v47, -inf }
 0x12e   : > { %v929_v26 = vmax.f32 %v927_v50, %v928_v51  ;;  %394 = vst [vmem:[#allocation2] sm:$0xff] %v393_v6 }
 0x12f   : > { %v982_v40 = vpop.permute.xlu1 %981  ;;  %v979_v25 = vpop.permute.xlu0 %978 }
 0x130   : > { %v930_v29 = vrot.slane %v929_v26, 4  ;;  %vm1022_vm6 = vcmp.eq.s32.totalorder %v982_v40, 1  ;;  %vm1021_vm7 = vcmp.eq.s32.totalorder %v979_v25, 1 }
 0x131   : > { %v1038_v14 = vsel %vm1022_vm6, %v2557_v1, -inf  ;;  %v1037_v42 = vsel %vm1021_vm7, %v2563_v48, -inf }
 0x132   : > { %v931_v39 = vmax.f32 %v929_v26, %v930_v29 }
 0x133   : > { %v988_v30 = vpop.permute.xlu1 %987  ;;  %v985_v36 = vpop.permute.xlu0 %984 }
 0x134   : > { %v932_v46 = vrot.slane %v931_v39, 2  ;;  %vm1024_vm2 = vcmp.eq.s32.totalorder %v988_v30, 1  ;;  %vm1023_vm3 = vcmp.eq.s32.totalorder %v985_v36, 1 }
 0x135   : > { %v1040_v9 = vsel %vm1024_vm2, %v2535_v23, -inf  ;;  %v1039_v41 = vsel %vm1023_vm3, %v2540_v4, -inf }
 0x136   : > { %v933_v20 = vmax.f32 %v931_v39, %v932_v46  ;;  %v1052_v58 = vmax.f32 %v1036_v10, %v1040_v9  ;;  %v1051_v49 = vmax.f32 %v1035_v54, %v1039_v41 }
 0x137   : > { %v994_v45 = vpop.permute.xlu1 %993  ;;  %v991_v55 = vpop.permute.xlu0 %990 }
 0x138   : > { %v934_v56 = vrot.slane %v933_v20, 1  ;;  %vm1026_vm8 = vcmp.eq.s32.totalorder %v994_v45, 1  ;;  %vm1025_vm9 = vcmp.eq.s32.totalorder %v991_v55, 1 }
 0x139   : > { %v1042_v44 = vsel %vm1026_vm8, %v2569_v53, -inf  ;;  %v1041_v31 = vsel %vm1025_vm9, %v2574_v16, -inf }
 0x13a   : > { %v935_v5 = vmax.f32 %v933_v20, %v934_v56  ;;  %v1054_v24 = vmax.f32 %v1038_v14, %v1042_v44  ;;  %v1053_v27 = vmax.f32 %v1037_v42, %v1041_v31  ;;  %v1072_v14 = vld [vmem:[#allocation4 + $0x4] sm:$0x1] }
 0x13b   : > { %v1000_v61 = vpop.permute.xlu1 %999  ;;  %v997_v37 = vpop.permute.xlu0 %996 }
 0x13c   : > { %v937_v7 = vmax.f32 %v936_v60, %v935_v5  ;;  %vm1028_vm10 = vcmp.eq.s32.totalorder %v1000_v61, 1  ;;  %vm1027_vm11 = vcmp.eq.s32.totalorder %v997_v37, 1 }
 0x13d   : > { %v1044_v59 = vsel %vm1028_vm10, %v2579_v43, -inf  ;;  %v1043_v38 = vsel %vm1027_vm11, %v2584_v13, -inf }
 0x13e   : > { %938 = vst [vmem:[#allocation4 + $0x3] sm:$0x1] %v937_v7  ;;  %v1056_v35 = vmax.f32 %v1052_v58, %v1044_v59  ;;  %v1055_v21 = vmax.f32 %v1051_v49, %v1043_v38 }
 0x13f   : > { %v1006_v52 = vpop.permute.xlu1 %1005  ;;  %v1003_v15 = vpop.permute.xlu0 %1002 }
 0x140   : > { %vm1030_vm12 = vcmp.eq.s32.totalorder %v1006_v52, 1  ;;  %vm1029_vm13 = vcmp.eq.s32.totalorder %v1003_v15, 1 }
 0x141   : > { %v1046_v8 = vsel %vm1030_vm12, %v2589_v28, -inf  ;;  %v1045_v11 = vsel %vm1029_vm13, %v2594_v57, -inf }
 0x142   : > { %v1058_v3 = vmax.f32 %v1054_v24, %v1046_v8  ;;  %v1057_v50 = vmax.f32 %v1053_v27, %v1045_v11 }
 0x143   : > { %v1012_v62 = vpop.permute.xlu1 %1011  ;;  %v1009_v63 = vpop.permute.xlu0 %1008 }
 0x144   : > { %vm1032_vm14 = vcmp.eq.s32.totalorder %v1012_v62, 1  ;;  %vm1031_vm15 = vcmp.eq.s32.totalorder %v1009_v63, 1 }
 0x145   : > { %v1048_v32 = vsel %vm1032_vm14, %v2599_v17, -inf  ;;  %v1047_v12 = vsel %vm1031_vm15, %v2603_v18, -inf }
 0x146   : > { %v1060_v40 = vmax.f32 %v1056_v35, %v1048_v32  ;;  %v1059_v25 = vmax.f32 %v1055_v21, %v1047_v12 }
 0x147   : > { %v1018_v51 = vpop.permute.xlu1 %1017  ;;  %v1015_v26 = vpop.permute.xlu0 %1014 }
 0x148   : > { %vm1034_vm0 = vcmp.eq.s32.totalorder %v1018_v51, 1  ;;  %vm1033_vm1 = vcmp.eq.s32.totalorder %v1015_v26, 1  ;;  %v1063_v45 = vmax.f32 %v1059_v25, %v1060_v40 }
 0x149   : > { %v1050_v29 = vsel %vm1034_vm0, %v2607_v19, -inf  ;;  %v1049_v39 = vsel %vm1033_vm1, %v2611_v34, -inf }
 0x14a   : > { %v1062_v30 = vmax.f32 %v1058_v3, %v1050_v29  ;;  %v1061_v36 = vmax.f32 %v1057_v50, %v1049_v39 }
 0x14b   : > { %v1112_v46 = vpop.permute.xlu1 %1111  ;;  %v1109_v20 = vpop.permute.xlu0 %1108 }
 0x14c   : > { %v1064_v55 = vmax.f32 %v1061_v36, %v1062_v30  ;;  %vm1156_vm4 = vcmp.eq.s32.totalorder %v1112_v46, 1  ;;  %vm1155_vm5 = vcmp.eq.s32.totalorder %v1109_v20, 1 }
 0x14d   : > { %v1172_v63 = vsel %vm1156_vm4, %v2545_v2, -inf  ;;  %v1171_v0 = vsel %vm1155_vm5, %v2551_v47, -inf }
 0x14e   : > { %v1065_v56 = vmax.f32 %v1063_v45, %v1064_v55 }
 0x14f   : > { %v1118_v60 = vpop.permute.xlu1 %1117  ;;  %v1115_v5 = vpop.permute.xlu0 %1114 }
 0x150   : > { %v1066_v61 = vrot.slane %v1065_v56, 4  ;;  %vm1158_vm6 = vcmp.eq.s32.totalorder %v1118_v60, 1  ;;  %vm1157_vm7 = vcmp.eq.s32.totalorder %v1115_v5, 1 }
 0x151   : > { %v1174_v8 = vsel %vm1158_vm6, %v2557_v1, -inf  ;;  %v1173_v11 = vsel %vm1157_vm7, %v2563_v48, -inf }
 0x152   : > { %v1067_v37 = vmax.f32 %v1065_v56, %v1066_v61 }
 0x153   : > { %v1124_v7 = vpop.permute.xlu1 %1123  ;;  %v1121_v52 = vpop.permute.xlu0 %1120 }
 0x154   : > { %v1068_v15 = vrot.slane %v1067_v37, 2  ;;  %vm1160_vm2 = vcmp.eq.s32.totalorder %v1124_v7, 1  ;;  %vm1159_vm3 = vcmp.eq.s32.totalorder %v1121_v52, 1 }
 0x155   : > { %v1176_v38 = vsel %vm1160_vm2, %v2535_v23, -inf  ;;  %v1175_v62 = vsel %vm1159_vm3, %v2540_v4, -inf }
 0x156   : > { %v1069_v9 = vmax.f32 %v1067_v37, %v1068_v15  ;;  %v1188_v32 = vmax.f32 %v1172_v63, %v1176_v38  ;;  %v1187_v12 = vmax.f32 %v1171_v0, %v1175_v62  ;;  %v1208_v38 = vld [vmem:[#allocation4 + $0x5] sm:$0x1] }
 0x157   : > { %v1130_v41 = vpop.permute.xlu1 %1129  ;;  %v1127_v10 = vpop.permute.xlu0 %1126 }
 0x158   : > { %v1070_v54 = vrot.slane %v1069_v9, 1  ;;  %vm1162_vm8 = vcmp.eq.s32.totalorder %v1130_v41, 1  ;;  %vm1161_vm9 = vcmp.eq.s32.totalorder %v1127_v10, 1 }
 0x159   : > { %v1178_v24 = vsel %vm1162_vm8, %v2569_v53, -inf  ;;  %v1177_v27 = vsel %vm1161_vm9, %v2574_v16, -inf }
 0x15a   : > { %v1071_v42 = vmax.f32 %v1069_v9, %v1070_v54  ;;  %v1190_v50 = vmax.f32 %v1174_v8, %v1178_v24  ;;  %v1189_v51 = vmax.f32 %v1173_v11, %v1177_v27 }
 0x15b   : > { %v1136_v44 = vpop.permute.xlu1 %1135  ;;  %v1133_v31 = vpop.permute.xlu0 %1132 }
 0x15c   : > { %v1073_v58 = vmax.f32 %v1072_v14, %v1071_v42  ;;  %vm1164_vm10 = vcmp.eq.s32.totalorder %v1136_v44, 1  ;;  %vm1163_vm11 = vcmp.eq.s32.totalorder %v1133_v31, 1 }
 0x15d   : > { %v1180_v33 = vsel %vm1164_vm10, %v2579_v43, -inf  ;;  %v1179_v35 = vsel %vm1163_vm11, %v2584_v13, -inf }
 0x15e   : > { %1074 = vst [vmem:[#allocation4 + $0x4] sm:$0x1] %v1073_v58  ;;  %v1192_v25 = vmax.f32 %v1188_v32, %v1180_v33  ;;  %v1191_v29 = vmax.f32 %v1187_v12, %v1179_v35 }
 0x15f   : > { %v1142_v49 = vpop.permute.xlu1 %1141  ;;  %v1139_v59 = vpop.permute.xlu0 %1138 }
 0x160   : > { %vm1166_vm12 = vcmp.eq.s32.totalorder %v1142_v49, 1  ;;  %vm1165_vm13 = vcmp.eq.s32.totalorder %v1139_v59, 1 }
 0x161   : > { %v1182_v22 = vsel %vm1166_vm12, %v2589_v28, -inf  ;;  %v1181_v3 = vsel %vm1165_vm13, %v2594_v57, -inf }
 0x162   : > { %v1194_v39 = vmax.f32 %v1190_v50, %v1182_v22  ;;  %v1193_v30 = vmax.f32 %v1189_v51, %v1181_v3 }
 0x163   : > { %v1148_v21 = vpop.permute.xlu1 %1147  ;;  %v1145_v6 = vpop.permute.xlu0 %1144 }
 0x164   : > { %vm1168_vm14 = vcmp.eq.s32.totalorder %v1148_v21, 1  ;;  %vm1167_vm15 = vcmp.eq.s32.totalorder %v1145_v6, 1 }
 0x165   : > { %v1184_v26 = vsel %vm1168_vm14, %v2599_v17, -inf  ;;  %v1183_v40 = vsel %vm1167_vm15, %v2603_v18, -inf }
 0x166   : > { %v1196_v20 = vmax.f32 %v1192_v25, %v1184_v26  ;;  %v1195_v45 = vmax.f32 %v1191_v29, %v1183_v40 }
 0x167   : > { %v1154_v36 = vpop.permute.xlu1 %1153  ;;  %v1151_v46 = vpop.permute.xlu0 %1150 }
 0x168   : > { %vm1170_vm0 = vcmp.eq.s32.totalorder %v1154_v36, 1  ;;  %vm1169_vm1 = vcmp.eq.s32.totalorder %v1151_v46, 1  ;;  %v1199_v7 = vmax.f32 %v1195_v45, %v1196_v20 }
 0x169   : > { %v1186_v55 = vsel %vm1170_vm0, %v2607_v19, -inf  ;;  %v1185_v56 = vsel %vm1169_vm1, %v2611_v34, -inf }
 0x16a   : > { %v1198_v60 = vmax.f32 %v1194_v39, %v1186_v55  ;;  %v1197_v5 = vmax.f32 %v1193_v30, %v1185_v56 }
 0x16b   : > { %v1248_v61 = vpop.permute.xlu1 %1247  ;;  %v1245_v37 = vpop.permute.xlu0 %1244 }
 0x16c   : > { %v1200_v52 = vmax.f32 %v1197_v5, %v1198_v60  ;;  %vm1292_vm4 = vcmp.eq.s32.totalorder %v1248_v61, 1  ;;  %vm1291_vm5 = vcmp.eq.s32.totalorder %v1245_v37, 1 }
 0x16d   : > { %v1308_v40 = vsel %vm1292_vm4, %v2545_v2, -inf  ;;  %v1307_v25 = vsel %vm1291_vm5, %v2551_v47, -inf }
 0x16e   : > { %v1201_v15 = vmax.f32 %v1199_v7, %v1200_v52 }
 0x16f   : > { %v1254_v9 = vpop.permute.xlu1 %1253  ;;  %v1251_v41 = vpop.permute.xlu0 %1250 }
 0x170   : > { %v1202_v10 = vrot.slane %v1201_v15, 4  ;;  %vm1294_vm7 = vcmp.eq.s32.totalorder %v1254_v9, 1  ;;  %vm1293_vm8 = vcmp.eq.s32.totalorder %v1251_v41, 1 }
 0x171   : > { %v1310_v39 = vsel %vm1294_vm7, %v2557_v1, -inf  ;;  %v1309_v30 = vsel %vm1293_vm8, %v2563_v48, -inf }
 0x172   : > { %v1203_v54 = vmax.f32 %v1201_v15, %v1202_v10 }
 0x173   : > { %v1260_v14 = vpop.permute.xlu1 %1259  ;;  %v1257_v42 = vpop.permute.xlu0 %1256 }
 0x174   : > { %v1204_v44 = vrot.slane %v1203_v54, 2  ;;  %vm1296_vm2 = vcmp.eq.s32.totalorder %v1260_v14, 1  ;;  %vm1295_vm3 = vcmp.eq.s32.totalorder %v1257_v42, 1 }
 0x175   : > { %v1312_v51 = vsel %vm1296_vm2, %v2535_v23, -inf  ;;  %v1311_v26 = vsel %vm1295_vm3, %v2540_v4, -inf }
 0x176   : > { %v1205_v31 = vmax.f32 %v1203_v54, %v1204_v44  ;;  %v1324_v20 = vmax.f32 %v1308_v40, %v1312_v51  ;;  %v1323_v45 = vmax.f32 %v1307_v25, %v1311_v26 }
 0x177   : > { %v1266_v58 = vpop.permute.xlu1 %1265  ;;  %v1263_v49 = vpop.permute.xlu0 %1262 }
 0x178   : > { %v1206_v59 = vrot.slane %v1205_v31, 1  ;;  %vm1298_vm6 = vcmp.eq.s32.totalorder %v1266_v58, 1  ;;  %vm1297_vm9 = vcmp.eq.s32.totalorder %v1263_v49, 1 }
 0x179   : > { %v1314_v29 = vsel %vm1298_vm6, %v2569_v53, -inf  ;;  %v1313_v36 = vsel %vm1297_vm9, %v2574_v16, -inf }
 0x17a   : > { %v1207_v62 = vmax.f32 %v1205_v31, %v1206_v59  ;;  %v1326_v5 = vmax.f32 %v1310_v39, %v1314_v29  ;;  %v1325_v61 = vmax.f32 %v1309_v30, %v1313_v36 }
 0x17b   : > { %v1272_v63 = vpop.permute.xlu1 %1271  ;;  %v1269_v0 = vpop.permute.xlu0 %1268 }
 0x17c   : > { %v1209_v8 = vmax.f32 %v1208_v38, %v1207_v62  ;;  %vm1300_vm10 = vcmp.eq.s32.totalorder %v1272_v63, 1  ;;  %vm1299_vm11 = vcmp.eq.s32.totalorder %v1269_v0, 1 }
 0x17d   : > { %v1316_v46 = vsel %vm1300_vm10, %v2579_v43, -inf  ;;  %v1315_v55 = vsel %vm1299_vm11, %v2584_v13, -inf }
 0x17e   : > { %1210 = vst [vmem:[#allocation4 + $0x5] sm:$0x1] %v1209_v8  ;;  %v1328_v37 = vmax.f32 %v1324_v20, %v1316_v46  ;;  %v1327_v7 = vmax.f32 %v1323_v45, %v1315_v55 }
 0x17f   : > { %v1384_v11 = vpop.permute.xlu1 %1383  ;;  %v1381_v24 = vpop.permute.xlu0 %1380 }
 0x180   : > { %vm1428_vm12 = vcmp.eq.s32.totalorder %v1384_v11, 1  ;;  %vm1427_vm13 = vcmp.eq.s32.totalorder %v1381_v24, 1 }
 0x181   : > { %v1444_v52 = vsel %vm1428_vm12, %v2545_v2, -inf  ;;  %v1443_v15 = vsel %vm1427_vm13, %v2551_v47, -inf }
 0x183   : > { %v1390_v27 = vpop.permute.xlu1 %1389  ;;  %v1387_v32 = vpop.permute.xlu0 %1386 }
 0x184   : > { %vm1430_vm0 = vcmp.eq.s32.totalorder %v1390_v27, 1  ;;  %vm1429_vm1 = vcmp.eq.s32.totalorder %v1387_v32, 1 }
 0x185   : > { %v1446_v14 = vsel %vm1430_vm0, %v2557_v1, -inf  ;;  %v1445_v42 = vsel %vm1429_vm1, %v2563_v48, -inf }
 0x187   : > { %v1396_v12 = vpop.permute.xlu1 %1395  ;;  %v1393_v33 = vpop.permute.xlu0 %1392 }
 0x188   : > { %vm1432_vm2 = vcmp.eq.s32.totalorder %v1396_v12, 1  ;;  %vm1431_vm3 = vcmp.eq.s32.totalorder %v1393_v33, 1 }
 0x189   : > { %v1448_v44 = vsel %vm1432_vm2, %v2535_v23, -inf  ;;  %v1447_v2 = vsel %vm1431_vm3, %v2540_v4, -inf }
 0x18a   : > { %v1460_v38 = vmax.f32 %v1444_v52, %v1448_v44  ;;  %v1459_v62 = vmax.f32 %v1443_v15, %v1447_v2 }
 0x18b   : > { %v1402_v35 = vpop.permute.xlu1 %1401  ;;  %v2646_v21 = vpop.permute.xlu0 %1398 }
 0x18c   : > { %vm1434_vm4 = vcmp.eq.s32.totalorder %v1402_v35, 1  ;;  %vm1433_vm7 = vcmp.eq.s32.totalorder %v2646_v21, 1 }
 0x18d   : > { %v1450_v58 = vsel %vm1434_vm4, %v2569_v53, -inf  ;;  %v1449_v0 = vsel %vm1433_vm7, %v2574_v16, -inf }
 0x18e   : > { %v1462_v27 = vmax.f32 %v1446_v14, %v1450_v58  ;;  %v1461_v16 = vmax.f32 %v1445_v42, %v1449_v0 }
 0x18f   : > { %v1278_v6 = vpop.permute.xlu1 %1277  ;;  %v1275_v22 = vpop.permute.xlu0 %1274 }
 0x190   : > { %vm1302_vm14 = vcmp.eq.s32.totalorder %v1278_v6, 1  ;;  %vm1301_vm15 = vcmp.eq.s32.totalorder %v1275_v22, 1 }
 0x191   : > { %v1318_v9 = vsel %vm1302_vm14, %v2589_v28, -inf  ;;  %v1317_v41 = vsel %vm1301_vm15, %v2594_v57, -inf }
 0x192   : > { %v1330_v49 = vmax.f32 %v1326_v5, %v1318_v9  ;;  %v1329_v59 = vmax.f32 %v1325_v61, %v1317_v41 }
 0x193   : > { %v2648_v3 = vpop.permute.xlu1 %1407  ;;  %v2650_v50 = vpop.permute.xlu0 %1404 }
 0x194   : > { %vm1436_vm8 = vcmp.eq.s32.totalorder %v2648_v3, 1  ;;  %vm1435_vm9 = vcmp.eq.s32.totalorder %v2650_v50, 1 }
 0x195   : > { %v1452_v8 = vsel %vm1436_vm8, %v2579_v43, -inf  ;;  %v1451_v32 = vsel %vm1435_vm9, %v2584_v13, -inf }
 0x196   : > { %v1464_v43 = vmax.f32 %v1460_v38, %v1452_v8  ;;  %v1463_v50 = vmax.f32 %v1459_v62, %v1451_v32 }
 0x197   : > { %v1414_v56 = vpop.permute.xlu1 %1413  ;;  %v1411_v60 = vpop.permute.xlu0 %1410 }
 0x198   : > { %vm1438_vm10 = vcmp.eq.s32.totalorder %v1414_v56, 1  ;;  %vm1437_vm11 = vcmp.eq.s32.totalorder %v1411_v60, 1 }
 0x199   : > { %v1454_v12 = vsel %vm1438_vm10, %v2589_v28, -inf  ;;  %v1453_v33 = vsel %vm1437_vm11, %v2594_v57, -inf }
 0x19a   : > { %v1466_v26 = vmax.f32 %v1462_v27, %v1454_v12  ;;  %v1465_v40 = vmax.f32 %v1461_v16, %v1453_v33 }
 0x19b   : > { %v1284_v10 = vpop.permute.xlu1 %1283  ;;  %v1281_v54 = vpop.permute.xlu0 %1280 }
 0x19c   : > { %vm1304_vm5 = vcmp.eq.s32.totalorder %v1284_v10, 1  ;;  %vm1303_vm6 = vcmp.eq.s32.totalorder %v1281_v54, 1  ;;  %v1480_v10 = vld [vmem:[#allocation4 + $0x7] sm:$0x1] }
 0x19d   : > { %v1320_v31 = vsel %vm1304_vm5, %v2599_v17, -inf  ;;  %v1319_v47 = vsel %vm1303_vm6, %v2603_v18, -inf }
 0x19e   : > { %v1332_v48 = vmax.f32 %v1328_v37, %v1320_v31  ;;  %v1331_v4 = vmax.f32 %v1327_v7, %v1319_v47  ;;  %v1344_v37 = vld [vmem:[#allocation4 + $0x6] sm:$0x1] }
 0x19f   : > { %v1290_v1 = vpop.permute.xlu1 %1289  ;;  %v1287_v23 = vpop.permute.xlu0 %1286 }
 0x1a0   : > { %vm1306_vm12 = vcmp.eq.s32.totalorder %v1290_v1, 1  ;;  %vm1305_vm13 = vcmp.eq.s32.totalorder %v1287_v23, 1  ;;  %v1335_v22 = vmax.f32 %v1331_v4, %v1332_v48 }
 0x1a1   : > { %v1322_v53 = vsel %vm1306_vm12, %v2607_v19, -inf  ;;  %v1321_v63 = vsel %vm1305_vm13, %v2611_v34, -inf }
 0x1a2   : > { %v1334_v11 = vmax.f32 %v1330_v49, %v1322_v53  ;;  %v1333_v24 = vmax.f32 %v1329_v59, %v1321_v63 }
 0x1a3   : > { %v1420_v35 = vpop.permute.xlu1 %1419  ;;  %v1417_v6 = vpop.permute.xlu0 %1416 }
 0x1a4   : > { %v1336_v21 = vmax.f32 %v1333_v24, %v1334_v11  ;;  %vm1440_vm14 = vcmp.eq.s32.totalorder %v1420_v35, 1  ;;  %vm1439_vm15 = vcmp.eq.s32.totalorder %v1417_v6, 1 }
 0x1a5   : > { %v1456_v3 = vsel %vm1440_vm14, %v2599_v17, -inf  ;;  %v1455_v51 = vsel %vm1439_vm15, %v2603_v18, -inf }
 0x1a6   : > { %v1337_v13 = vmax.f32 %v1335_v22, %v1336_v21  ;;  %v1468_v28 = vmax.f32 %v1464_v43, %v1456_v3  ;;  %v1467_v39 = vmax.f32 %v1463_v50, %v1455_v51 }
 0x1a7   : > { %v1426_v25 = vpop.permute.xlu1 %1425  ;;  %v1423_v29 = vpop.permute.xlu0 %1422 }
 0x1a8   : > { %v1338_v57 = vrot.slane %v1337_v13, 4  ;;  %vm1442_vm0 = vcmp.eq.s32.totalorder %v1426_v25, 1  ;;  %vm1441_vm1 = vcmp.eq.s32.totalorder %v1423_v29, 1  ;;  %v1471_v18 = vmax.f32 %v1467_v39, %v1468_v28 }
 0x1a9   : > { %v1458_v30 = vsel %vm1442_vm0, %v2607_v19, -inf  ;;  %v1457_v36 = vsel %vm1441_vm1, %v2611_v34, -inf }
 0x1aa   : > { %v1339_v46 = vmax.f32 %v1337_v13, %v1338_v57  ;;  %v1470_v20 = vmax.f32 %v1466_v26, %v1458_v30  ;;  %v1469_v17 = vmax.f32 %v1465_v40, %v1457_v36 }
 0x1ac   : > { %v1340_v45 = vrot.slane %v1339_v46, 2  ;;  %v1472_v55 = vmax.f32 %v1469_v17, %v1470_v20 }
 0x1ae   : > { %v1341_v56 = vmax.f32 %v1339_v46, %v1340_v45  ;;  %v1473_v60 = vmax.f32 %v1471_v18, %v1472_v55 }
 0x1b0   : > { %v1342_v5 = vrot.slane %v1341_v56, 1  ;;  %v1474_v61 = vrot.slane %v1473_v60, 4 }
 0x1b2   : > { %v1343_v7 = vmax.f32 %v1341_v56, %v1342_v5  ;;  %v1475_v52 = vmax.f32 %v1473_v60, %v1474_v61 }
 0x1b4   : > { %v1345_v15 = vmax.f32 %v1344_v37, %v1343_v7  ;;  %v1476_v9 = vrot.slane %v1475_v52, 2 }
 0x1b6   : > { %1346 = vst [vmem:[#allocation4 + $0x6] sm:$0x1] %v1345_v15  ;;  %v1477_v41 = vmax.f32 %v1475_v52, %v1476_v9 }
 0x1b8   : > { %v1478_v19 = vrot.slane %v1477_v41, 1 }
 0x1ba   : > { %v1479_v34 = vmax.f32 %v1477_v41, %v1478_v19 }
 0x1bc   : > { %v1481_v54 = vmax.f32 %v1480_v10, %v1479_v34 }
 0x1be   : > { %1482 = vst [vmem:[#allocation4 + $0x7] sm:$0x1] %v1481_v54 }
 0x1bf PF: > { %v1486_v14 = vld [vmem:[#allocation2] sm:$0xff]  ;;  %v1925_v42 = vmov 32   ;;  %v1926_v2 = vmov 0   ;;  %s1643_s8 = smul.u32 384, %s1907_s22  ;;  %s1521_s9 = sshll.u32 %s2034_s26, 4  ;;  %s2702_s9 = int_to_ptr.vmem [resolvable:$true] %s1521_s9 }
 0x1c0   : > { %1820 = vset.pattern.permute.xlu0 %v1925_v42  ;;  %v1487_v44 = vmax.f32 %v1486_v14, 1.0  ;;  %1504 = vst [vmem:[%s2034_s26 + $0x8] sm:$0xff] %v1486_v14  ;;  %vm1495_vm2 = vcmp.gt.f32.partialorder %v1486_v14, 0.0  ;;  %s1507_s13 = scalar_lea.sflag [#allocation8], %s236_s7  ;;  %s1835_s14 = scalar_lea.vmem %s2702_s9, 384 }
 0x1c1   : > { %v1497_v31 = vsel %vm1495_vm2, 1, %v1926_v2  ;;  %s2700_s12 = scalar_lea.hbm %s2754_s4, %s1643_s8  ;;  %p1836_p4 = scmp.ne.s32.totalorder %s2702_s9, %s1835_s14 }
 0x1c2   : > { %1490 = vperm.xlu0 %1820, %v1487_v44   ;;  %s1927_s22 = smov [#allocation7]  }
 0x1c3   : > { %p1837_p5 = pnand %p1836_p4, %p1996_p9  ;;  %s1839_s15 = sshll.u32 %s1927_s22, 4  ;;  %s1840_s15 = int_to_ptr.vmem [resolvable:$false] %s1839_s15 }
 0x1c4   : > { %s1841_s16 = scalar_lea.vmem %s1840_s15, 768  ;;  %p1842_p7 = scmp.lt.s32.totalorder %s2702_s9, %s1840_s15 }
 0x1c5   : > { %v1496_v58 = vld [vmem:[#allocation4] sm:$0xff]  ;;  %p1838_p6 = pneg %p1837_p5  ;;  %p1843_p8 = scmp.lt.s32.totalorder %s1841_s16, %s1835_s14 }
 0x1c6   : > { %1499 = vperm.xlu0 %1820, %v1497_v31  }
 0x1c7   : > { %p1844_p10 = por %p1843_p8, %p1842_p7 }
 0x1c9   : > { %p1845_p11 = pnand %p1844_p10, %p1838_p6 }
 0x241   : > { %v1491_v47 = vpop.permute.xlu0 %1490 }
 0x242   : > { %1821 = vrcp.f32 %v1491_v47 }
 0x245   : > { %v1500_v49 = vpop.permute.xlu0 %1499 }
 0x246   : > { %vm1501_vm3 = vcmp.eq.s32.totalorder %v1500_v49, 1 }
 0x247   : > { %v1502_v59 = vsel %vm1501_vm3, %v1496_v58, 0.0 }
 0x248   : > { %1503 = vst [vmem:[%s2034_s26] sm:$0xff] %v1502_v59 }
 0x24c   : > { %v1822_v1 = vpop.eup %1821 }
 0x24d   : > { %v1494_v23 = vmul.f32 %v1822_v1, %v1486_v14 }
 0x24f   : > { %1505 = vst [vmem:[%s2034_s26 + $0x10] sm:$0xff] %v1494_v23 }
 0x250   : > { %1848 = shalt.err (!%p1845_p11)
}
 0x251   : > { %s1849_s7 = scalar_lea.hbm %s2700_s12, 384  ;;  %s1853_s19 = scalar_lea.hbm %s2754_s4, 1152 }
 0x252   : > { %p1850_p12 = scmp.ne.s32.totalorder %s2700_s12, %s1849_s7  ;;  %p1854_p2 = scmp.lt.u32.totalorder %s2700_s12, %s2754_s4 }
 0x253   : > { %p1855_p3 = scmp.lt.u32.totalorder %s1853_s19, %s1849_s7  ;;  %p1857_p5 = scmp.lt.u32.totalorder %s1849_s7, %s2700_s12 }
 0x254   : > { %p1851_p0 = pnand %p1850_p12, %p1996_p9 }
 0x255   : > { %p1856_p4 = por %p1855_p3, %p1854_p2 }
 0x256   : > { %p1852_p1 = pneg %p1851_p0 }
 0x257   : > { %p1858_p6 = por %p1857_p5, %p1856_p4 }
 0x259   : > { %p1859_p7 = pnand %p1858_p6, %p1852_p1 }
 0x25b   : > { %1862 = shalt.err (!%p1859_p7)
}
 0x25c   : > { %1721 = dma.vmem_to_hbm [thread:$0]  (%p1996_p9), %s2702_s9, 384, %s2700_s12, %s1507_s13  }
 0x25d PF: > { %p1727_p8 = scmp.ge.s32.totalorder %s1915_s24, 2  ;;  %s1533_s28 = sand.u32 1, %s1895_s20  }
 0x25e   : > { %s1534_s30 = scalar_lea.sflag [#allocation8], %s1533_s28 }
 0x25f   : > { %p1724_p10 = pnand %p1727_p8, %p2003_p13 }
 0x261   : > { %1890 = dma.done.wait (!%p1724_p10), %s1534_s30, 384  }
 0x262   : > { %1892 = vsyncadd (!%p1724_p10), %s1534_s30, 4294966912  ;;  %s23_s24 = sadd.s32 1, %s1915_s24   ;;  %s2757_s20 = smov %s1899_s21 }
 0x263   : > { %p20_p11 = scmp.ge.s32.totalorder %s23_s24, 5   ;;  %s2758_s21 = smov %s1903_s0 }
 0x264   : > { %s2759_s0 = smov %s2009_s6  ;;  %s2760_s22 = smov %s1911_s23 }
 0x265   : > { %s2761_s23 = smov %s2763_s27  ;;  %22 = sbr.rel (!%p20_p11) target bundleno = 19 (0x13), region = 85 }
 0x26c   :  { %1539 = vsyncpa [#allocation8], 1 }
 0x26d   :  { %1541 = vsyncpa [#allocation8 + $0x1], 1 }

</bundles_post_ra>
